<compile_context>
chip_gen: v7x
topology: tpu7x:2x2x1
jax: 0.10.0
libtpu: 0.0.40
codegen_flags: <defaults>
</compile_context>

<pallas_src>
import functools

import numpy as np
import jax
import jax.numpy as jnp
from jax import lax
from jax.experimental import pallas as pl
from jax.experimental.pallas import tpu as pltpu


# ----------------------------------------------------------------------------
# Host-side structural constants (pure functions of the static shapes)
# ----------------------------------------------------------------------------
def _axis_interp_matrix(n_out, n_in):
  """1-D bilinear interpolation matrix (align_corners=True), (n_out, n_in)."""
  A = np.zeros((n_out, n_in), np.float32)
  for i in range(n_out):
    src = 0.0 if (n_out == 1 or n_in == 1) else i * (n_in - 1) / (n_out - 1)
    i0 = int(np.floor(src))
    i1 = min(i0 + 1, n_in - 1)
    w1 = src - i0
    A[i, i0] += 1.0 - w1
    A[i, i1] += w1
  return A


def _y_interp_consts(n_out, n_in):
  """Static (i0, i1, a0, a1) per output row for align_corners=True bilinear."""
  i0s, i1s, a0s, a1s = [], [], [], []
  for i in range(n_out):
    src = 0.0 if (n_out == 1 or n_in == 1) else i * (n_in - 1) / (n_out - 1)
    i0 = int(np.floor(src))
    i1 = min(i0 + 1, n_in - 1)
    a1 = float(src - i0)
    i0s.append(i0)
    i1s.append(i1)
    a0s.append(1.0 - a1)
    a1s.append(a1)
  return tuple(i0s), tuple(i1s), tuple(a0s), tuple(a1s)


def _warp_base_and_masks(H, W):
  """Base unnormalized sample coords (2, HW) and 3x3-conv boundary masks (9, HW).

  base_ix = x*W/(W-1) - 0.5 so that in-kernel ix = base_ix + 0.5*flow_x matches
  linspace(-1,1) base grid + flow/W followed by grid_sample align_corners=False.
  """
  yy, xx = np.meshgrid(np.arange(H), np.arange(W), indexing="ij")
  sx = W / (W - 1) if W > 1 else 0.0
  sy = H / (H - 1) if H > 1 else 0.0
  base = np.stack([xx.reshape(-1) * sx - 0.5,
                   yy.reshape(-1) * sy - 0.5], axis=0).astype(np.float32)
  masks = np.zeros((9, H * W), np.float32)
  for k in range(9):
    dy, dx = k // 3 - 1, k % 3 - 1
    m = (yy + dy >= 0) & (yy + dy < H) & (xx + dx >= 0) & (xx + dx < W)
    masks[k] = m.reshape(-1).astype(np.float32)
  return base, masks


# ----------------------------------------------------------------------------
# Pallas kernel (one grid step == one batch element)
# ----------------------------------------------------------------------------
def _aligned_kernel(low_ref, high_ref, wl_ref, wh_ref, axT_ref, wfg_ref,
                    base_ref, cmask_ref, out_ref, hup_scr, *,
                    H, W, cin, cout, y_i0, y_i1, y_a0, y_a1):
  f32 = jnp.float32
  HW = H * W

  low = low_ref[0]                                                   # (cin, HW)
  high = high_ref[0]                                                 # (Hh*cin, Wh)

  # ---- down_l: 1x1 conv (channel matmul, pixels lane-dense) ---------------
  low_d = jnp.dot(wl_ref[...], low, preferred_element_type=f32)      # (cout, HW)

  # ---- bilinear upsample (align_corners=True), separable, then down_h -----
  # x direction: one small matmul against the (Wh, W) interpolation matrix.
  t1 = jnp.dot(high, axT_ref[...], preferred_element_type=f32)       # (Hh*cin, W)
  # y direction: every output row is a static mix of (at most) two source rows.
  for y in range(H):
    b0 = t1[y_i0[y] * cin:(y_i0[y] + 1) * cin, :]                    # (cin, W)
    b1 = t1[y_i1[y] * cin:(y_i1[y] + 1) * cin, :]
    hup_scr[:, y * W:(y + 1) * W] = y_a0[y] * b0 + y_a1[y] * b1
  # 1x1 conv and bilinear upsample are both linear and commute exactly.
  h_up = jnp.dot(wh_ref[...], hup_scr[...], preferred_element_type=f32)  # (cout, HW)

  # ---- fused flow_make (2 ch) + flow_gate (1 ch): 3x3 conv, zero padding ---
  # taps[(k,o), p] = sum_c W[o, c, ky, kx] * cat([h_up, low_d])[c, p]
  wfg = wfg_ref[...]                                                 # (27, 2*cout)
  taps = (jnp.dot(wfg[:, :cout], h_up, preferred_element_type=f32)
          + jnp.dot(wfg[:, cout:], low_d, preferred_element_type=f32))   # (27, HW)
  cmasks = cmask_ref[...]                                            # (9, HW)
  acc = jnp.zeros((3, HW), f32)
  for k in range(9):
    dy, dx = k // 3 - 1, k % 3 - 1
    s = dy * W + dx
    tap = taps[3 * k:3 * k + 3, :]                                   # (3, HW)
    if s != 0:
      # shifted[p] = tap[p + s]; lane-wrapped entries are killed by the mask.
      tap = jnp.roll(tap, -s, axis=1)
    acc = acc + tap * cmasks[k:k + 1, :]
  fx = acc[0:1, :]                       # flow x-component (pixels, along W)
  fy = acc[1:2, :]                       # flow y-component (pixels, along H)
  gate = jax.nn.sigmoid(acc[2:3, :])     # (1, HW)

  # ---- flow_warp: bilinear grid_sample, zeros padding, align_corners=False -
  # Folded grid algebra: ix = x*W/(W-1) - 0.5 + 0.5*fx (base term precomputed).
  ix = base_ref[0:1, :] + 0.5 * fx                                   # (1, HW)
  iy = base_ref[1:2, :] + 0.5 * fy
  x0f = jnp.floor(ix)
  y0f = jnp.floor(iy)
  x0 = x0f.astype(jnp.int32)
  y0 = y0f.astype(jnp.int32)
  wx1 = ix - x0f
  wx0 = 1.0 - wx1
  wy1 = iy - y0f
  wy0 = 1.0 - wy1

  # Separable gather weights; out-of-range corners match no row/col -> zeros.
  xc = lax.broadcasted_iota(jnp.int32, (W, HW), 0)
  col_w = (jnp.where(xc == x0, wx0, 0.0)
           + jnp.where(xc == x0 + 1, wx1, 0.0))                      # (W, HW)
  yc = lax.broadcasted_iota(jnp.int32, (H, HW), 0)
  row_w = (jnp.where(yc == y0, wy0, 0.0)
           + jnp.where(yc == y0 + 1, wy1, 0.0))                      # (H, HW)

  # warped[c, p] = sum_y row_w[y, p] * sum_x col_w[x, p] * low_d[c, y*W + x]
  warped = jnp.zeros((cout, HW), f32)
  for y in range(H):
    g = jnp.dot(low_d[:, y * W:(y + 1) * W], col_w,
                preferred_element_type=f32)                          # (cout, HW)
    warped = warped + row_w[y:y + 1, :] * g

  # ---- reversed residual: gate * warp + down-projected low feature --------
  out_ref[0] = gate * warped + low_d


# ----------------------------------------------------------------------------
# Wrapper (NCHW in / NCHW out, matching the PyTorch module interface)
# ----------------------------------------------------------------------------
def aligned_module_forward(low_nchw, high_nchw, params):
  N, Cin, H, W = low_nchw.shape
  _, Cin2, Hh, Wh = high_nchw.shape
  assert Cin2 == Cin
  Cout = params["wl"].shape[0]
  HW = H * W

  low = low_nchw.reshape(N, Cin, HW)                                  # free reshape
  # rows ordered yh*Cin + ci so per-source-row channel blocks are contiguous.
  high_r = jnp.transpose(high_nchw, (0, 2, 1, 3)).reshape(N, Hh * Cin, Wh)

  axT = jnp.asarray(_axis_interp_matrix(W, Wh).T)                     # (Wh, W)
  y_i0, y_i1, y_a0, y_a1 = _y_interp_consts(H, Hh)
  base_np, masks_np = _warp_base_and_masks(H, W)
  base = jnp.asarray(base_np)                                         # (2, HW)
  cmasks = jnp.asarray(masks_np)                                      # (9, HW)

  kernel = functools.partial(
      _aligned_kernel, H=H, W=W, cin=Cin, cout=Cout,
      y_i0=y_i0, y_i1=y_i1, y_a0=y_a0, y_a1=y_a1)

  flops_per_batch = (
      2 * (Hh * Cin) * Wh * W            # x-direction upsample matmul
      + 3 * H * Cin * W                  # y-direction row mixing
      + 2 * 2 * Cout * Cin * HW          # two 1x1 convs
      + 2 * 2 * 27 * Cout * HW           # fused 3x3-conv taps
      + 2 * 9 * 3 * HW                   # tap accumulation
      + 2 * H * Cout * W * HW            # warp gather matmuls
      + 3 * H * Cout * HW                # row-weighted reduce
      + 60 * HW)                         # flow / coordinate / weight math
  cost = pl.CostEstimate(
      flops=int(N * flops_per_batch),
      transcendentals=int(N * HW),
      bytes_accessed=int(4 * (low.size + high_r.size + N * Cout * HW
                              + params["wl"].size + params["wh"].size
                              + params["wfg"].size + base.size + cmasks.size)))

  out_flat = pl.pallas_call(
      kernel,
      out_shape=jax.ShapeDtypeStruct((N, Cout, HW), jnp.float32),
      grid_spec=pltpu.PrefetchScalarGridSpec(
          num_scalar_prefetch=0,
          grid=(N,),
          in_specs=[
              pl.BlockSpec((1, Cin, HW), lambda n: (n, 0, 0)),        # low
              pl.BlockSpec((1, Hh * Cin, Wh), lambda n: (n, 0, 0)),   # high
              pl.BlockSpec((Cout, Cin), lambda n: (0, 0)),            # down_l weight
              pl.BlockSpec((Cout, Cin), lambda n: (0, 0)),            # down_h weight
              pl.BlockSpec((Wh, W), lambda n: (0, 0)),                # x-upsample matrix^T
              pl.BlockSpec((27, 2 * Cout), lambda n: (0, 0)),         # fused flow+gate weight
              pl.BlockSpec((2, HW), lambda n: (0, 0)),                # warp base coordinates
              pl.BlockSpec((9, HW), lambda n: (0, 0)),                # conv boundary masks
          ],
          out_specs=pl.BlockSpec((1, Cout, HW), lambda n: (n, 0, 0)),
          scratch_shapes=[pltpu.VMEM((Cin, HW), jnp.float32)],        # upsampled high feat
      ),
      compiler_params=pltpu.CompilerParams(
          dimension_semantics=("parallel",),
          vmem_limit_bytes=16 << 20,
      ),
      cost_estimate=cost,
  )(low, high_r, params["wl"], params["wh"], axT, params["wfg"], base, cmasks)

  return out_flat.reshape(N, Cout, H, W)


def init_params(key, inplane, outplane, kernel_size=3):
  assert kernel_size == 3
  k1, k2, k3, k4 = jax.random.split(key, 4)
  # down_l / down_h: 1x1 convs, torch weight layout (out, in)
  wl = 0.1 * jax.random.normal(k1, (outplane, inplane), jnp.float32)
  wh = 0.1 * jax.random.normal(k2, (outplane, inplane), jnp.float32)
  # flow_make: 3x3 conv 2C->2 ; flow_gate: 3x3 conv 2C->1 (torch layout (o,c,ky,kx))
  wflow = 0.1 * jax.random.normal(k3, (2, 2 * outplane, 3, 3), jnp.float32)
  wgate = 0.1 * jax.random.normal(k4, (1, 2 * outplane, 3, 3), jnp.float32)
  w3 = jnp.concatenate([wflow, wgate], axis=0)                   # (3, 2C, 3, 3)
  # fused weight: row = (ky*3 + kx)*3 + o ; columns = [h channels | low channels]
  wfg = jnp.transpose(w3, (2, 3, 0, 1)).reshape(27, 2 * outplane)
  return {"wl": wl, "wh": wh, "wfg": wfg}


if __name__ == "__main__":
  N, inplane, outplane = 2, 4, 4
  H, W = 16, 16       # low_feature spatial size (= output size)
  Hh, Wh = 8, 8       # h_feature spatial size (upsampled to (H, W))

  key = jax.random.PRNGKey(0)
  k_low, k_high, k_params = jax.random.split(key, 3)
  low_feature = jax.random.normal(k_low, (N, inplane, H, W), jnp.float32)
  h_feature = jax.random.normal(k_high, (N, inplane, Hh, Wh), jnp.float32)

  params = init_params(k_params, inplane, outplane)

  out = aligned_module_forward(low_feature, h_feature, params)
  out = jax.block_until_ready(out)
  assert out.shape == (N, outplane, H, W)
  print("KERNEL_OK")
</pallas_src>

<mosaic_0001>
module attributes {stable_mosaic.version = 11 : i64} {
  func.func @_aligned_kernel(%arg0: i32, %arg1: memref<1x4x256xf32, #tpu.memory_space<vmem>>, %arg2: memref<1x32x8xf32, #tpu.memory_space<vmem>>, %arg3: memref<4x4xf32, #tpu.memory_space<vmem>>, %arg4: memref<4x4xf32, #tpu.memory_space<vmem>>, %arg5: memref<8x16xf32, #tpu.memory_space<vmem>>, %arg6: memref<27x8xf32, #tpu.memory_space<vmem>>, %arg7: memref<2x256xf32, #tpu.memory_space<vmem>>, %arg8: memref<9x256xf32, #tpu.memory_space<vmem>>, %arg9: memref<1x4x256xf32, #tpu.memory_space<vmem>>, %arg10: memref<4x256xf32, #tpu.memory_space<vmem>>) attributes {dimension_semantics = [#tpu.dimension_semantics<parallel>], iteration_bounds = array<i64: 2>, scalar_prefetch = 0 : i64, scratch_operands = 1 : i64, tpu.core_type = #tpu.core_type<tc>, window_params = [{transform_indices = @transform_0, window_bounds = array<i64: 1, 4, 256>}, {transform_indices = @transform_1, window_bounds = array<i64: 1, 32, 8>}, {pipeline_mode = #tpu.pipeline_mode<synchronous>, transform_indices = @transform_2, window_bounds = array<i64: 4, 4>}, {pipeline_mode = #tpu.pipeline_mode<synchronous>, transform_indices = @transform_3, window_bounds = array<i64: 4, 4>}, {pipeline_mode = #tpu.pipeline_mode<synchronous>, transform_indices = @transform_4, window_bounds = array<i64: 8, 16>}, {pipeline_mode = #tpu.pipeline_mode<synchronous>, transform_indices = @transform_5, window_bounds = array<i64: 27, 8>}, {pipeline_mode = #tpu.pipeline_mode<synchronous>, transform_indices = @transform_6, window_bounds = array<i64: 2, 256>}, {pipeline_mode = #tpu.pipeline_mode<synchronous>, transform_indices = @transform_7, window_bounds = array<i64: 9, 256>}, {transform_indices = @transform_8, window_bounds = array<i64: 1, 4, 256>}]} {
    %c0 = arith.constant 0 : index
    %c0_0 = arith.constant 0 : index
    %c0_1 = arith.constant 0 : index
    %0 = vector.load %arg1[%c0, %c0_0, %c0_1] : memref<1x4x256xf32, #tpu.memory_space<vmem>>, vector<1x4x256xf32>
    %1 = vector.shape_cast %0 : vector<1x4x256xf32> to vector<4x256xf32>
    %c0_2 = arith.constant 0 : index
    %c0_3 = arith.constant 0 : index
    %c0_4 = arith.constant 0 : index
    %2 = vector.load %arg2[%c0_2, %c0_3, %c0_4] : memref<1x32x8xf32, #tpu.memory_space<vmem>>, vector<1x32x8xf32>
    %3 = vector.shape_cast %2 : vector<1x32x8xf32> to vector<32x8xf32>
    %c0_5 = arith.constant 0 : index
    %c0_6 = arith.constant 0 : index
    %4 = vector.load %arg3[%c0_5, %c0_6] : memref<4x4xf32, #tpu.memory_space<vmem>>, vector<4x4xf32>
    %cst = arith.constant dense<0.000000e+00> : vector<4x256xf32>
    %5 = tpu.matmul %4, %1, %cst {dimension_numbers = #tpu.dot_dimension_numbers<[1], [0], [0], [1], [0, 0, 1, 1], [], []>} : vector<4x4xf32>, vector<4x256xf32>, vector<4x256xf32> -> vector<4x256xf32>
    %c0_7 = arith.constant 0 : index
    %c0_8 = arith.constant 0 : index
    %6 = vector.load %arg5[%c0_7, %c0_8] : memref<8x16xf32, #tpu.memory_space<vmem>>, vector<8x16xf32>
    %cst_9 = arith.constant dense<0.000000e+00> : vector<32x16xf32>
    %7 = tpu.matmul %3, %6, %cst_9 {dimension_numbers = #tpu.dot_dimension_numbers<[1], [0], [0], [1], [0, 0, 1, 1], [], []>} : vector<32x8xf32>, vector<8x16xf32>, vector<32x16xf32> -> vector<32x16xf32>
    %8 = vector.extract_strided_slice %7 {offsets = [0, 0], sizes = [4, 16], strides = [1, 1]} : vector<32x16xf32> to vector<4x16xf32>
    %9 = vector.extract_strided_slice %7 {offsets = [4, 0], sizes = [4, 16], strides = [1, 1]} : vector<32x16xf32> to vector<4x16xf32>
    %cst_10 = arith.constant 1.000000e+00 : f32
    %10 = vector.broadcast %cst_10 : f32 to vector<4x16xf32>
    %11 = arith.mulf %10, %8 : vector<4x16xf32>
    %cst_11 = arith.constant 0.000000e+00 : f32
    %12 = vector.broadcast %cst_11 : f32 to vector<4x16xf32>
    %13 = arith.mulf %12, %9 : vector<4x16xf32>
    %14 = arith.addf %11, %13 : vector<4x16xf32>
    %c0_12 = arith.constant 0 : index
    %c0_13 = arith.constant 0 : index
    %15 = vector.load %arg10[%c0_12, %c0_13] : memref<4x256xf32, #tpu.memory_space<vmem>>, vector<4x16xf32>
    tpu.vector_store %arg10[%c0_12, %c0_13], %14 {strides = array<i32>} : memref<4x256xf32, #tpu.memory_space<vmem>>, vector<4x16xf32>,
    %16 = vector.extract_strided_slice %7 {offsets = [0, 0], sizes = [4, 16], strides = [1, 1]} : vector<32x16xf32> to vector<4x16xf32>
    %17 = vector.extract_strided_slice %7 {offsets = [4, 0], sizes = [4, 16], strides = [1, 1]} : vector<32x16xf32> to vector<4x16xf32>
    %cst_14 = arith.constant 0.533333361 : f32
    %18 = vector.broadcast %cst_14 : f32 to vector<4x16xf32>
    %19 = arith.mulf %18, %16 : vector<4x16xf32>
    %cst_15 = arith.constant 0.466666669 : f32
    %20 = vector.broadcast %cst_15 : f32 to vector<4x16xf32>
    %21 = arith.mulf %20, %17 : vector<4x16xf32>
    %22 = arith.addf %19, %21 : vector<4x16xf32>
    %c0_16 = arith.constant 0 : index
    %c16 = arith.constant 16 : index
    %23 = vector.load %arg10[%c0_16, %c16] : memref<4x256xf32, #tpu.memory_space<vmem>>, vector<4x16xf32>
    tpu.vector_store %arg10[%c0_16, %c16], %22 {strides = array<i32>} : memref<4x256xf32, #tpu.memory_space<vmem>>, vector<4x16xf32>,
    %24 = vector.extract_strided_slice %7 {offsets = [0, 0], sizes = [4, 16], strides = [1, 1]} : vector<32x16xf32> to vector<4x16xf32>
    %25 = vector.extract_strided_slice %7 {offsets = [4, 0], sizes = [4, 16], strides = [1, 1]} : vector<32x16xf32> to vector<4x16xf32>
    %cst_17 = arith.constant 0.0666666701 : f32
    %26 = vector.broadcast %cst_17 : f32 to vector<4x16xf32>
    %27 = arith.mulf %26, %24 : vector<4x16xf32>
    %cst_18 = arith.constant 0.933333337 : f32
    %28 = vector.broadcast %cst_18 : f32 to vector<4x16xf32>
    %29 = arith.mulf %28, %25 : vector<4x16xf32>
    %30 = arith.addf %27, %29 : vector<4x16xf32>
    %c0_19 = arith.constant 0 : index
    %c32 = arith.constant 32 : index
    %31 = vector.load %arg10[%c0_19, %c32] : memref<4x256xf32, #tpu.memory_space<vmem>>, vector<4x16xf32>
    tpu.vector_store %arg10[%c0_19, %c32], %30 {strides = array<i32>} : memref<4x256xf32, #tpu.memory_space<vmem>>, vector<4x16xf32>,
    %32 = vector.extract_strided_slice %7 {offsets = [4, 0], sizes = [4, 16], strides = [1, 1]} : vector<32x16xf32> to vector<4x16xf32>
    %33 = vector.extract_strided_slice %7 {offsets = [8, 0], sizes = [4, 16], strides = [1, 1]} : vector<32x16xf32> to vector<4x16xf32>
    %cst_20 = arith.constant 6.000000e-01 : f32
    %34 = vector.broadcast %cst_20 : f32 to vector<4x16xf32>
    %35 = arith.mulf %34, %32 : vector<4x16xf32>
    %cst_21 = arith.constant 4.000000e-01 : f32
    %36 = vector.broadcast %cst_21 : f32 to vector<4x16xf32>
    %37 = arith.mulf %36, %33 : vector<4x16xf32>
    %38 = arith.addf %35, %37 : vector<4x16xf32>
    %c0_22 = arith.constant 0 : index
    %c48 = arith.constant 48 : index
    %39 = vector.load %arg10[%c0_22, %c48] : memref<4x256xf32, #tpu.memory_space<vmem>>, vector<4x16xf32>
    tpu.vector_store %arg10[%c0_22, %c48], %38 {strides = array<i32>} : memref<4x256xf32, #tpu.memory_space<vmem>>, vector<4x16xf32>,
    %40 = vector.extract_strided_slice %7 {offsets = [4, 0], sizes = [4, 16], strides = [1, 1]} : vector<32x16xf32> to vector<4x16xf32>
    %41 = vector.extract_strided_slice %7 {offsets = [8, 0], sizes = [4, 16], strides = [1, 1]} : vector<32x16xf32> to vector<4x16xf32>
    %cst_23 = arith.constant 0.13333334 : f32
    %42 = vector.broadcast %cst_23 : f32 to vector<4x16xf32>
    %43 = arith.mulf %42, %40 : vector<4x16xf32>
    %cst_24 = arith.constant 0.866666674 : f32
    %44 = vector.broadcast %cst_24 : f32 to vector<4x16xf32>
    %45 = arith.mulf %44, %41 : vector<4x16xf32>
    %46 = arith.addf %43, %45 : vector<4x16xf32>
    %c0_25 = arith.constant 0 : index
    %c64 = arith.constant 64 : index
    %47 = vector.load %arg10[%c0_25, %c64] : memref<4x256xf32, #tpu.memory_space<vmem>>, vector<4x16xf32>
    tpu.vector_store %arg10[%c0_25, %c64], %46 {strides = array<i32>} : memref<4x256xf32, #tpu.memory_space<vmem>>, vector<4x16xf32>,
    %48 = vector.extract_strided_slice %7 {offsets = [8, 0], sizes = [4, 16], strides = [1, 1]} : vector<32x16xf32> to vector<4x16xf32>
    %49 = vector.extract_strided_slice %7 {offsets = [12, 0], sizes = [4, 16], strides = [1, 1]} : vector<32x16xf32> to vector<4x16xf32>
    %cst_26 = arith.constant 0.666666686 : f32
    %50 = vector.broadcast %cst_26 : f32 to vector<4x16xf32>
    %51 = arith.mulf %50, %48 : vector<4x16xf32>
    %cst_27 = arith.constant 0.333333343 : f32
    %52 = vector.broadcast %cst_27 : f32 to vector<4x16xf32>
    %53 = arith.mulf %52, %49 : vector<4x16xf32>
    %54 = arith.addf %51, %53 : vector<4x16xf32>
    %c0_28 = arith.constant 0 : index
    %c80 = arith.constant 80 : index
    %55 = vector.load %arg10[%c0_28, %c80] : memref<4x256xf32, #tpu.memory_space<vmem>>, vector<4x16xf32>
    tpu.vector_store %arg10[%c0_28, %c80], %54 {strides = array<i32>} : memref<4x256xf32, #tpu.memory_space<vmem>>, vector<4x16xf32>,
    %56 = vector.extract_strided_slice %7 {offsets = [8, 0], sizes = [4, 16], strides = [1, 1]} : vector<32x16xf32> to vector<4x16xf32>
    %57 = vector.extract_strided_slice %7 {offsets = [12, 0], sizes = [4, 16], strides = [1, 1]} : vector<32x16xf32> to vector<4x16xf32>
    %cst_29 = arith.constant 2.000000e-01 : f32
    %58 = vector.broadcast %cst_29 : f32 to vector<4x16xf32>
    %59 = arith.mulf %58, %56 : vector<4x16xf32>
    %cst_30 = arith.constant 8.000000e-01 : f32
    %60 = vector.broadcast %cst_30 : f32 to vector<4x16xf32>
    %61 = arith.mulf %60, %57 : vector<4x16xf32>
    %62 = arith.addf %59, %61 : vector<4x16xf32>
    %c0_31 = arith.constant 0 : index
    %c96 = arith.constant 96 : index
    %63 = vector.load %arg10[%c0_31, %c96] : memref<4x256xf32, #tpu.memory_space<vmem>>, vector<4x16xf32>
    tpu.vector_store %arg10[%c0_31, %c96], %62 {strides = array<i32>} : memref<4x256xf32, #tpu.memory_space<vmem>>, vector<4x16xf32>,
    %64 = vector.extract_strided_slice %7 {offsets = [12, 0], sizes = [4, 16], strides = [1, 1]} : vector<32x16xf32> to vector<4x16xf32>
    %65 = vector.extract_strided_slice %7 {offsets = [16, 0], sizes = [4, 16], strides = [1, 1]} : vector<32x16xf32> to vector<4x16xf32>
    %cst_32 = arith.constant 0.733333349 : f32
    %66 = vector.broadcast %cst_32 : f32 to vector<4x16xf32>
    %67 = arith.mulf %66, %64 : vector<4x16xf32>
    %cst_33 = arith.constant 0.266666681 : f32
    %68 = vector.broadcast %cst_33 : f32 to vector<4x16xf32>
    %69 = arith.mulf %68, %65 : vector<4x16xf32>
    %70 = arith.addf %67, %69 : vector<4x16xf32>
    %c0_34 = arith.constant 0 : index
    %c112 = arith.constant 112 : index
    %71 = vector.load %arg10[%c0_34, %c112] : memref<4x256xf32, #tpu.memory_space<vmem>>, vector<4x16xf32>
    tpu.vector_store %arg10[%c0_34, %c112], %70 {strides = array<i32>} : memref<4x256xf32, #tpu.memory_space<vmem>>, vector<4x16xf32>,
    %72 = vector.extract_strided_slice %7 {offsets = [12, 0], sizes = [4, 16], strides = [1, 1]} : vector<32x16xf32> to vector<4x16xf32>
    %73 = vector.extract_strided_slice %7 {offsets = [16, 0], sizes = [4, 16], strides = [1, 1]} : vector<32x16xf32> to vector<4x16xf32>
    %cst_35 = arith.constant 0.266666681 : f32
    %74 = vector.broadcast %cst_35 : f32 to vector<4x16xf32>
    %75 = arith.mulf %74, %72 : vector<4x16xf32>
    %cst_36 = arith.constant 0.733333349 : f32
    %76 = vector.broadcast %cst_36 : f32 to vector<4x16xf32>
    %77 = arith.mulf %76, %73 : vector<4x16xf32>
    %78 = arith.addf %75, %77 : vector<4x16xf32>
    %c0_37 = arith.constant 0 : index
    %c128 = arith.constant 128 : index
    %79 = vector.load %arg10[%c0_37, %c128] : memref<4x256xf32, #tpu.memory_space<vmem>>, vector<4x16xf32>
    tpu.vector_store %arg10[%c0_37, %c128], %78 {strides = array<i32>} : memref<4x256xf32, #tpu.memory_space<vmem>>, vector<4x16xf32>,
    %80 = vector.extract_strided_slice %7 {offsets = [16, 0], sizes = [4, 16], strides = [1, 1]} : vector<32x16xf32> to vector<4x16xf32>
    %81 = vector.extract_strided_slice %7 {offsets = [20, 0], sizes = [4, 16], strides = [1, 1]} : vector<32x16xf32> to vector<4x16xf32>
    %cst_38 = arith.constant 8.000000e-01 : f32
    %82 = vector.broadcast %cst_38 : f32 to vector<4x16xf32>
    %83 = arith.mulf %82, %80 : vector<4x16xf32>
    %cst_39 = arith.constant 2.000000e-01 : f32
    %84 = vector.broadcast %cst_39 : f32 to vector<4x16xf32>
    %85 = arith.mulf %84, %81 : vector<4x16xf32>
    %86 = arith.addf %83, %85 : vector<4x16xf32>
    %c0_40 = arith.constant 0 : index
    %c144 = arith.constant 144 : index
    %87 = vector.load %arg10[%c0_40, %c144] : memref<4x256xf32, #tpu.memory_space<vmem>>, vector<4x16xf32>
    tpu.vector_store %arg10[%c0_40, %c144], %86 {strides = array<i32>} : memref<4x256xf32, #tpu.memory_space<vmem>>, vector<4x16xf32>,
    %88 = vector.extract_strided_slice %7 {offsets = [16, 0], sizes = [4, 16], strides = [1, 1]} : vector<32x16xf32> to vector<4x16xf32>
    %89 = vector.extract_strided_slice %7 {offsets = [20, 0], sizes = [4, 16], strides = [1, 1]} : vector<32x16xf32> to vector<4x16xf32>
    %cst_41 = arith.constant 0.333333343 : f32
    %90 = vector.broadcast %cst_41 : f32 to vector<4x16xf32>
    %91 = arith.mulf %90, %88 : vector<4x16xf32>
    %cst_42 = arith.constant 0.666666686 : f32
    %92 = vector.broadcast %cst_42 : f32 to vector<4x16xf32>
    %93 = arith.mulf %92, %89 : vector<4x16xf32>
    %94 = arith.addf %91, %93 : vector<4x16xf32>
    %c0_43 = arith.constant 0 : index
    %c160 = arith.constant 160 : index
    %95 = vector.load %arg10[%c0_43, %c160] : memref<4x256xf32, #tpu.memory_space<vmem>>, vector<4x16xf32>
    tpu.vector_store %arg10[%c0_43, %c160], %94 {strides = array<i32>} : memref<4x256xf32, #tpu.memory_space<vmem>>, vector<4x16xf32>,
    %96 = vector.extract_strided_slice %7 {offsets = [20, 0], sizes = [4, 16], strides = [1, 1]} : vector<32x16xf32> to vector<4x16xf32>
    %97 = vector.extract_strided_slice %7 {offsets = [24, 0], sizes = [4, 16], strides = [1, 1]} : vector<32x16xf32> to vector<4x16xf32>
    %cst_44 = arith.constant 0.866666674 : f32
    %98 = vector.broadcast %cst_44 : f32 to vector<4x16xf32>
    %99 = arith.mulf %98, %96 : vector<4x16xf32>
    %cst_45 = arith.constant 0.13333334 : f32
    %100 = vector.broadcast %cst_45 : f32 to vector<4x16xf32>
    %101 = arith.mulf %100, %97 : vector<4x16xf32>
    %102 = arith.addf %99, %101 : vector<4x16xf32>
    %c0_46 = arith.constant 0 : index
    %c176 = arith.constant 176 : index
    %103 = vector.load %arg10[%c0_46, %c176] : memref<4x256xf32, #tpu.memory_space<vmem>>, vector<4x16xf32>
    tpu.vector_store %arg10[%c0_46, %c176], %102 {strides = array<i32>} : memref<4x256xf32, #tpu.memory_space<vmem>>, vector<4x16xf32>,
    %104 = vector.extract_strided_slice %7 {offsets = [20, 0], sizes = [4, 16], strides = [1, 1]} : vector<32x16xf32> to vector<4x16xf32>
    %105 = vector.extract_strided_slice %7 {offsets = [24, 0], sizes = [4, 16], strides = [1, 1]} : vector<32x16xf32> to vector<4x16xf32>
    %cst_47 = arith.constant 4.000000e-01 : f32
    %106 = vector.broadcast %cst_47 : f32 to vector<4x16xf32>
    %107 = arith.mulf %106, %104 : vector<4x16xf32>
    %cst_48 = arith.constant 6.000000e-01 : f32
    %108 = vector.broadcast %cst_48 : f32 to vector<4x16xf32>
    %109 = arith.mulf %108, %105 : vector<4x16xf32>
    %110 = arith.addf %107, %109 : vector<4x16xf32>
    %c0_49 = arith.constant 0 : index
    %c192 = arith.constant 192 : index
    %111 = vector.load %arg10[%c0_49, %c192] : memref<4x256xf32, #tpu.memory_space<vmem>>, vector<4x16xf32>
    tpu.vector_store %arg10[%c0_49, %c192], %110 {strides = array<i32>} : memref<4x256xf32, #tpu.memory_space<vmem>>, vector<4x16xf32>,
    %112 = vector.extract_strided_slice %7 {offsets = [24, 0], sizes = [4, 16], strides = [1, 1]} : vector<32x16xf32> to vector<4x16xf32>
    %113 = vector.extract_strided_slice %7 {offsets = [28, 0], sizes = [4, 16], strides = [1, 1]} : vector<32x16xf32> to vector<4x16xf32>
    %cst_50 = arith.constant 0.933333337 : f32
    %114 = vector.broadcast %cst_50 : f32 to vector<4x16xf32>
    %115 = arith.mulf %114, %112 : vector<4x16xf32>
    %cst_51 = arith.constant 0.0666666701 : f32
    %116 = vector.broadcast %cst_51 : f32 to vector<4x16xf32>
    %117 = arith.mulf %116, %113 : vector<4x16xf32>
    %118 = arith.addf %115, %117 : vector<4x16xf32>
    %c0_52 = arith.constant 0 : index
    %c208 = arith.constant 208 : index
    %119 = vector.load %arg10[%c0_52, %c208] : memref<4x256xf32, #tpu.memory_space<vmem>>, vector<4x16xf32>
    tpu.vector_store %arg10[%c0_52, %c208], %118 {strides = array<i32>} : memref<4x256xf32, #tpu.memory_space<vmem>>, vector<4x16xf32>,
    %120 = vector.extract_strided_slice %7 {offsets = [24, 0], sizes = [4, 16], strides = [1, 1]} : vector<32x16xf32> to vector<4x16xf32>
    %121 = vector.extract_strided_slice %7 {offsets = [28, 0], sizes = [4, 16], strides = [1, 1]} : vector<32x16xf32> to vector<4x16xf32>
    %cst_53 = arith.constant 0.466666669 : f32
    %122 = vector.broadcast %cst_53 : f32 to vector<4x16xf32>
    %123 = arith.mulf %122, %120 : vector<4x16xf32>
    %cst_54 = arith.constant 0.533333361 : f32
    %124 = vector.broadcast %cst_54 : f32 to vector<4x16xf32>
    %125 = arith.mulf %124, %121 : vector<4x16xf32>
    %126 = arith.addf %123, %125 : vector<4x16xf32>
    %c0_55 = arith.constant 0 : index
    %c224 = arith.constant 224 : index
    %127 = vector.load %arg10[%c0_55, %c224] : memref<4x256xf32, #tpu.memory_space<vmem>>, vector<4x16xf32>
    tpu.vector_store %arg10[%c0_55, %c224], %126 {strides = array<i32>} : memref<4x256xf32, #tpu.memory_space<vmem>>, vector<4x16xf32>,
    %128 = vector.extract_strided_slice %7 {offsets = [28, 0], sizes = [4, 16], strides = [1, 1]} : vector<32x16xf32> to vector<4x16xf32>
    %129 = vector.extract_strided_slice %7 {offsets = [28, 0], sizes = [4, 16], strides = [1, 1]} : vector<32x16xf32> to vector<4x16xf32>
    %cst_56 = arith.constant 1.000000e+00 : f32
    %130 = vector.broadcast %cst_56 : f32 to vector<4x16xf32>
    %131 = arith.mulf %130, %128 : vector<4x16xf32>
    %cst_57 = arith.constant 0.000000e+00 : f32
    %132 = vector.broadcast %cst_57 : f32 to vector<4x16xf32>
    %133 = arith.mulf %132, %129 : vector<4x16xf32>
    %134 = arith.addf %131, %133 : vector<4x16xf32>
    %c0_58 = arith.constant 0 : index
    %c240 = arith.constant 240 : index
    %135 = vector.load %arg10[%c0_58, %c240] : memref<4x256xf32, #tpu.memory_space<vmem>>, vector<4x16xf32>
    tpu.vector_store %arg10[%c0_58, %c240], %134 {strides = array<i32>} : memref<4x256xf32, #tpu.memory_space<vmem>>, vector<4x16xf32>,
    %c0_59 = arith.constant 0 : index
    %c0_60 = arith.constant 0 : index
    %136 = vector.load %arg4[%c0_59, %c0_60] : memref<4x4xf32, #tpu.memory_space<vmem>>, vector<4x4xf32>
    %c0_61 = arith.constant 0 : index
    %c0_62 = arith.constant 0 : index
    %137 = vector.load %arg10[%c0_61, %c0_62] : memref<4x256xf32, #tpu.memory_space<vmem>>, vector<4x256xf32>
    %cst_63 = arith.constant dense<0.000000e+00> : vector<4x256xf32>
    %138 = tpu.matmul %136, %137, %cst_63 {dimension_numbers = #tpu.dot_dimension_numbers<[1], [0], [0], [1], [0, 0, 1, 1], [], []>} : vector<4x4xf32>, vector<4x256xf32>, vector<4x256xf32> -> vector<4x256xf32>
    %c0_64 = arith.constant 0 : index
    %c0_65 = arith.constant 0 : index
    %139 = vector.load %arg6[%c0_64, %c0_65] : memref<27x8xf32, #tpu.memory_space<vmem>>, vector<27x8xf32>
    %140 = vector.extract_strided_slice %139 {offsets = [0, 0], sizes = [27, 4], strides = [1, 1]} : vector<27x8xf32> to vector<27x4xf32>
    %cst_66 = arith.constant dense<0.000000e+00> : vector<27x256xf32>
    %141 = tpu.matmul %140, %138, %cst_66 {dimension_numbers = #tpu.dot_dimension_numbers<[1], [0], [0], [1], [0, 0, 1, 1], [], []>} : vector<27x4xf32>, vector<4x256xf32>, vector<27x256xf32> -> vector<27x256xf32>
    %142 = vector.extract_strided_slice %139 {offsets = [0, 4], sizes = [27, 4], strides = [1, 1]} : vector<27x8xf32> to vector<27x4xf32>
    %cst_67 = arith.constant dense<0.000000e+00> : vector<27x256xf32>
    %143 = tpu.matmul %142, %5, %cst_67 {dimension_numbers = #tpu.dot_dimension_numbers<[1], [0], [0], [1], [0, 0, 1, 1], [], []>} : vector<27x4xf32>, vector<4x256xf32>, vector<27x256xf32> -> vector<27x256xf32>
    %144 = arith.addf %141, %143 : vector<27x256xf32>
    %c0_68 = arith.constant 0 : index
    %c0_69 = arith.constant 0 : index
    %145 = vector.load %arg8[%c0_68, %c0_69] : memref<9x256xf32, #tpu.memory_space<vmem>>, vector<9x256xf32>
    %cst_70 = arith.constant 0.000000e+00 : f32
    %146 = vector.broadcast %cst_70 : f32 to vector<3x256xf32>
    %147 = vector.extract_strided_slice %144 {offsets = [0, 0], sizes = [3, 256], strides = [1, 1]} : vector<27x256xf32> to vector<3x256xf32>
    %148 = vector.extract_strided_slice %147 {offsets = [0, 239], sizes = [3, 17], strides = [1, 1]} : vector<3x256xf32> to vector<3x17xf32>
    %149 = vector.extract_strided_slice %147 {offsets = [0, 0], sizes = [3, 239], strides = [1, 1]} : vector<3x256xf32> to vector<3x239xf32>
    %150 = tpu.concatenate %148, %149 in 1 : vector<3x17xf32>, vector<3x239xf32> -> vector<3x256xf32>
    %151 = vector.extract_strided_slice %145 {offsets = [0, 0], sizes = [1, 256], strides = [1, 1]} : vector<9x256xf32> to vector<1x256xf32>
    %152 = vector.broadcast %151 : vector<1x256xf32> to vector<3x256xf32>
    %153 = arith.mulf %150, %152 : vector<3x256xf32>
    %154 = arith.addf %146, %153 : vector<3x256xf32>
    %155 = vector.extract_strided_slice %144 {offsets = [3, 0], sizes = [3, 256], strides = [1, 1]} : vector<27x256xf32> to vector<3x256xf32>
    %156 = vector.extract_strided_slice %155 {offsets = [0, 240], sizes = [3, 16], strides = [1, 1]} : vector<3x256xf32> to vector<3x16xf32>
    %157 = vector.extract_strided_slice %155 {offsets = [0, 0], sizes = [3, 240], strides = [1, 1]} : vector<3x256xf32> to vector<3x240xf32>
    %158 = tpu.concatenate %156, %157 in 1 : vector<3x16xf32>, vector<3x240xf32> -> vector<3x256xf32>
    %159 = vector.extract_strided_slice %145 {offsets = [1, 0], sizes = [1, 256], strides = [1, 1]} : vector<9x256xf32> to vector<1x256xf32>
    %160 = vector.broadcast %159 : vector<1x256xf32> to vector<3x256xf32>
    %161 = arith.mulf %158, %160 : vector<3x256xf32>
    %162 = arith.addf %154, %161 : vector<3x256xf32>
    %163 = vector.extract_strided_slice %144 {offsets = [6, 0], sizes = [3, 256], strides = [1, 1]} : vector<27x256xf32> to vector<3x256xf32>
    %164 = vector.extract_strided_slice %163 {offsets = [0, 241], sizes = [3, 15], strides = [1, 1]} : vector<3x256xf32> to vector<3x15xf32>
    %165 = vector.extract_strided_slice %163 {offsets = [0, 0], sizes = [3, 241], strides = [1, 1]} : vector<3x256xf32> to vector<3x241xf32>
    %166 = tpu.concatenate %164, %165 in 1 : vector<3x15xf32>, vector<3x241xf32> -> vector<3x256xf32>
    %167 = vector.extract_strided_slice %145 {offsets = [2, 0], sizes = [1, 256], strides = [1, 1]} : vector<9x256xf32> to vector<1x256xf32>
    %168 = vector.broadcast %167 : vector<1x256xf32> to vector<3x256xf32>
    %169 = arith.mulf %166, %168 : vector<3x256xf32>
    %170 = arith.addf %162, %169 : vector<3x256xf32>
    %171 = vector.extract_strided_slice %144 {offsets = [9, 0], sizes = [3, 256], strides = [1, 1]} : vector<27x256xf32> to vector<3x256xf32>
    %172 = vector.extract_strided_slice %171 {offsets = [0, 255], sizes = [3, 1], strides = [1, 1]} : vector<3x256xf32> to vector<3x1xf32>
    %173 = vector.extract_strided_slice %171 {offsets = [0, 0], sizes = [3, 255], strides = [1, 1]} : vector<3x256xf32> to vector<3x255xf32>
    %174 = tpu.concatenate %172, %173 in 1 : vector<3x1xf32>, vector<3x255xf32> -> vector<3x256xf32>
    %175 = vector.extract_strided_slice %145 {offsets = [3, 0], sizes = [1, 256], strides = [1, 1]} : vector<9x256xf32> to vector<1x256xf32>
    %176 = vector.broadcast %175 : vector<1x256xf32> to vector<3x256xf32>
    %177 = arith.mulf %174, %176 : vector<3x256xf32>
    %178 = arith.addf %170, %177 : vector<3x256xf32>
    %179 = vector.extract_strided_slice %144 {offsets = [12, 0], sizes = [3, 256], strides = [1, 1]} : vector<27x256xf32> to vector<3x256xf32>
    %180 = vector.extract_strided_slice %145 {offsets = [4, 0], sizes = [1, 256], strides = [1, 1]} : vector<9x256xf32> to vector<1x256xf32>
    %181 = vector.broadcast %180 : vector<1x256xf32> to vector<3x256xf32>
    %182 = arith.mulf %179, %181 : vector<3x256xf32>
    %183 = arith.addf %178, %182 : vector<3x256xf32>
    %184 = vector.extract_strided_slice %144 {offsets = [15, 0], sizes = [3, 256], strides = [1, 1]} : vector<27x256xf32> to vector<3x256xf32>
    %185 = vector.extract_strided_slice %184 {offsets = [0, 1], sizes = [3, 255], strides = [1, 1]} : vector<3x256xf32> to vector<3x255xf32>
    %186 = vector.extract_strided_slice %184 {offsets = [0, 0], sizes = [3, 1], strides = [1, 1]} : vector<3x256xf32> to vector<3x1xf32>
    %187 = tpu.concatenate %185, %186 in 1 : vector<3x255xf32>, vector<3x1xf32> -> vector<3x256xf32>
    %188 = vector.extract_strided_slice %145 {offsets = [5, 0], sizes = [1, 256], strides = [1, 1]} : vector<9x256xf32> to vector<1x256xf32>
    %189 = vector.broadcast %188 : vector<1x256xf32> to vector<3x256xf32>
    %190 = arith.mulf %187, %189 : vector<3x256xf32>
    %191 = arith.addf %183, %190 : vector<3x256xf32>
    %192 = vector.extract_strided_slice %144 {offsets = [18, 0], sizes = [3, 256], strides = [1, 1]} : vector<27x256xf32> to vector<3x256xf32>
    %193 = vector.extract_strided_slice %192 {offsets = [0, 15], sizes = [3, 241], strides = [1, 1]} : vector<3x256xf32> to vector<3x241xf32>
    %194 = vector.extract_strided_slice %192 {offsets = [0, 0], sizes = [3, 15], strides = [1, 1]} : vector<3x256xf32> to vector<3x15xf32>
    %195 = tpu.concatenate %193, %194 in 1 : vector<3x241xf32>, vector<3x15xf32> -> vector<3x256xf32>
    %196 = vector.extract_strided_slice %145 {offsets = [6, 0], sizes = [1, 256], strides = [1, 1]} : vector<9x256xf32> to vector<1x256xf32>
    %197 = vector.broadcast %196 : vector<1x256xf32> to vector<3x256xf32>
    %198 = arith.mulf %195, %197 : vector<3x256xf32>
    %199 = arith.addf %191, %198 : vector<3x256xf32>
    %200 = vector.extract_strided_slice %144 {offsets = [21, 0], sizes = [3, 256], strides = [1, 1]} : vector<27x256xf32> to vector<3x256xf32>
    %201 = vector.extract_strided_slice %200 {offsets = [0, 16], sizes = [3, 240], strides = [1, 1]} : vector<3x256xf32> to vector<3x240xf32>
    %202 = vector.extract_strided_slice %200 {offsets = [0, 0], sizes = [3, 16], strides = [1, 1]} : vector<3x256xf32> to vector<3x16xf32>
    %203 = tpu.concatenate %201, %202 in 1 : vector<3x240xf32>, vector<3x16xf32> -> vector<3x256xf32>
    %204 = vector.extract_strided_slice %145 {offsets = [7, 0], sizes = [1, 256], strides = [1, 1]} : vector<9x256xf32> to vector<1x256xf32>
    %205 = vector.broadcast %204 : vector<1x256xf32> to vector<3x256xf32>
    %206 = arith.mulf %203, %205 : vector<3x256xf32>
    %207 = arith.addf %199, %206 : vector<3x256xf32>
    %208 = vector.extract_strided_slice %144 {offsets = [24, 0], sizes = [3, 256], strides = [1, 1]} : vector<27x256xf32> to vector<3x256xf32>
    %209 = vector.extract_strided_slice %208 {offsets = [0, 17], sizes = [3, 239], strides = [1, 1]} : vector<3x256xf32> to vector<3x239xf32>
    %210 = vector.extract_strided_slice %208 {offsets = [0, 0], sizes = [3, 17], strides = [1, 1]} : vector<3x256xf32> to vector<3x17xf32>
    %211 = tpu.concatenate %209, %210 in 1 : vector<3x239xf32>, vector<3x17xf32> -> vector<3x256xf32>
    %212 = vector.extract_strided_slice %145 {offsets = [8, 0], sizes = [1, 256], strides = [1, 1]} : vector<9x256xf32> to vector<1x256xf32>
    %213 = vector.broadcast %212 : vector<1x256xf32> to vector<3x256xf32>
    %214 = arith.mulf %211, %213 : vector<3x256xf32>
    %215 = arith.addf %207, %214 : vector<3x256xf32>
    %216 = vector.extract_strided_slice %215 {offsets = [0, 0], sizes = [1, 256], strides = [1, 1]} : vector<3x256xf32> to vector<1x256xf32>
    %217 = vector.extract_strided_slice %215 {offsets = [1, 0], sizes = [1, 256], strides = [1, 1]} : vector<3x256xf32> to vector<1x256xf32>
    %218 = vector.extract_strided_slice %215 {offsets = [2, 0], sizes = [1, 256], strides = [1, 1]} : vector<3x256xf32> to vector<1x256xf32>
    %219 = arith.negf %218 : vector<1x256xf32>
    %220 = math.exp %219 : vector<1x256xf32>
    %cst_71 = arith.constant 1.000000e+00 : f32
    %221 = vector.broadcast %cst_71 : f32 to vector<1x256xf32>
    %222 = arith.addf %221, %220 : vector<1x256xf32>
    %223 = arith.divf %221, %222 : vector<1x256xf32>
    %c0_72 = arith.constant 0 : index
    %c0_73 = arith.constant 0 : index
    %224 = vector.load %arg7[%c0_72, %c0_73] : memref<2x256xf32, #tpu.memory_space<vmem>>, vector<1x256xf32>
    %cst_74 = arith.constant 5.000000e-01 : f32
    %225 = vector.broadcast %cst_74 : f32 to vector<1x256xf32>
    %226 = arith.mulf %225, %216 : vector<1x256xf32>
    %227 = arith.addf %224, %226 : vector<1x256xf32>
    %c1 = arith.constant 1 : index
    %c0_75 = arith.constant 0 : index
    %228 = vector.load %arg7[%c1, %c0_75] : memref<2x256xf32, #tpu.memory_space<vmem>>, vector<1x256xf32>
    %cst_76 = arith.constant 5.000000e-01 : f32
    %229 = vector.broadcast %cst_76 : f32 to vector<1x256xf32>
    %230 = arith.mulf %229, %217 : vector<1x256xf32>
    %231 = arith.addf %228, %230 : vector<1x256xf32>
    %232 = math.floor %227 : vector<1x256xf32>
    %233 = math.floor %231 : vector<1x256xf32>
    %234 = arith.fptosi %232 : vector<1x256xf32> to vector<1x256xi32>
    %235 = arith.fptosi %233 : vector<1x256xf32> to vector<1x256xi32>
    %236 = arith.subf %227, %232 : vector<1x256xf32>
    %cst_77 = arith.constant 1.000000e+00 : f32
    %237 = vector.broadcast %cst_77 : f32 to vector<1x256xf32>
    %238 = arith.subf %237, %236 : vector<1x256xf32>
    %239 = arith.subf %231, %233 : vector<1x256xf32>
    %cst_78 = arith.constant 1.000000e+00 : f32
    %240 = vector.broadcast %cst_78 : f32 to vector<1x256xf32>
    %241 = arith.subf %240, %239 : vector<1x256xf32>
    %242 = tpu.iota {dimensions = array<i32: 0>} : vector<16x256xi32>
    %243 = vector.broadcast %234 : vector<1x256xi32> to vector<16x256xi32>
    %244 = arith.cmpi eq, %242, %243 : vector<16x256xi32>
    %cst_79 = arith.constant 0.000000e+00 : f32
    %245 = vector.shape_cast %238 : vector<1x256xf32> to vector<1x256xf32>
    %246 = vector.broadcast %245 : vector<1x256xf32> to vector<16x256xf32>
    %247 = vector.broadcast %cst_79 : f32 to vector<16x256xf32>
    %248 = arith.select %244, %246, %247 : vector<16x256xi1>, vector<16x256xf32>
    %c1_i32 = arith.constant 1 : i32
    %249 = vector.broadcast %c1_i32 : i32 to vector<1x256xi32>
    %250 = arith.addi %234, %249 : vector<1x256xi32>
    %251 = vector.broadcast %250 : vector<1x256xi32> to vector<16x256xi32>
    %252 = arith.cmpi eq, %242, %251 : vector<16x256xi32>
    %cst_80 = arith.constant 0.000000e+00 : f32
    %253 = vector.shape_cast %236 : vector<1x256xf32> to vector<1x256xf32>
    %254 = vector.broadcast %253 : vector<1x256xf32> to vector<16x256xf32>
    %255 = vector.broadcast %cst_80 : f32 to vector<16x256xf32>
    %256 = arith.select %252, %254, %255 : vector<16x256xi1>, vector<16x256xf32>
    %257 = arith.addf %248, %256 : vector<16x256xf32>
    %258 = tpu.iota {dimensions = array<i32: 0>} : vector<16x256xi32>
    %259 = vector.broadcast %235 : vector<1x256xi32> to vector<16x256xi32>
    %260 = arith.cmpi eq, %258, %259 : vector<16x256xi32>
    %cst_81 = arith.constant 0.000000e+00 : f32
    %261 = vector.shape_cast %241 : vector<1x256xf32> to vector<1x256xf32>
    %262 = vector.broadcast %261 : vector<1x256xf32> to vector<16x256xf32>
    %263 = vector.broadcast %cst_81 : f32 to vector<16x256xf32>
    %264 = arith.select %260, %262, %263 : vector<16x256xi1>, vector<16x256xf32>
    %c1_i32_82 = arith.constant 1 : i32
    %265 = vector.broadcast %c1_i32_82 : i32 to vector<1x256xi32>
    %266 = arith.addi %235, %265 : vector<1x256xi32>
    %267 = vector.broadcast %266 : vector<1x256xi32> to vector<16x256xi32>
    %268 = arith.cmpi eq, %258, %267 : vector<16x256xi32>
    %cst_83 = arith.constant 0.000000e+00 : f32
    %269 = vector.shape_cast %239 : vector<1x256xf32> to vector<1x256xf32>
    %270 = vector.broadcast %269 : vector<1x256xf32> to vector<16x256xf32>
    %271 = vector.broadcast %cst_83 : f32 to vector<16x256xf32>
    %272 = arith.select %268, %270, %271 : vector<16x256xi1>, vector<16x256xf32>
    %273 = arith.addf %264, %272 : vector<16x256xf32>
    %cst_84 = arith.constant 0.000000e+00 : f32
    %274 = vector.broadcast %cst_84 : f32 to vector<4x256xf32>
    %275 = vector.extract_strided_slice %5 {offsets = [0, 0], sizes = [4, 16], strides = [1, 1]} : vector<4x256xf32> to vector<4x16xf32>
    %cst_85 = arith.constant dense<0.000000e+00> : vector<4x256xf32>
    %276 = tpu.matmul %275, %257, %cst_85 {dimension_numbers = #tpu.dot_dimension_numbers<[1], [0], [0], [1], [0, 0, 1, 1], [], []>} : vector<4x16xf32>, vector<16x256xf32>, vector<4x256xf32> -> vector<4x256xf32>
    %277 = vector.extract_strided_slice %273 {offsets = [0, 0], sizes = [1, 256], strides = [1, 1]} : vector<16x256xf32> to vector<1x256xf32>
    %278 = vector.broadcast %277 : vector<1x256xf32> to vector<4x256xf32>
    %279 = arith.mulf %278, %276 : vector<4x256xf32>
    %280 = arith.addf %274, %279 : vector<4x256xf32>
    %281 = vector.extract_strided_slice %5 {offsets = [0, 16], sizes = [4, 16], strides = [1, 1]} : vector<4x256xf32> to vector<4x16xf32>
    %cst_86 = arith.constant dense<0.000000e+00> : vector<4x256xf32>
    %282 = tpu.matmul %281, %257, %cst_86 {dimension_numbers = #tpu.dot_dimension_numbers<[1], [0], [0], [1], [0, 0, 1, 1], [], []>} : vector<4x16xf32>, vector<16x256xf32>, vector<4x256xf32> -> vector<4x256xf32>
    %283 = vector.extract_strided_slice %273 {offsets = [1, 0], sizes = [1, 256], strides = [1, 1]} : vector<16x256xf32> to vector<1x256xf32>
    %284 = vector.broadcast %283 : vector<1x256xf32> to vector<4x256xf32>
    %285 = arith.mulf %284, %282 : vector<4x256xf32>
    %286 = arith.addf %280, %285 : vector<4x256xf32>
    %287 = vector.extract_strided_slice %5 {offsets = [0, 32], sizes = [4, 16], strides = [1, 1]} : vector<4x256xf32> to vector<4x16xf32>
    %cst_87 = arith.constant dense<0.000000e+00> : vector<4x256xf32>
    %288 = tpu.matmul %287, %257, %cst_87 {dimension_numbers = #tpu.dot_dimension_numbers<[1], [0], [0], [1], [0, 0, 1, 1], [], []>} : vector<4x16xf32>, vector<16x256xf32>, vector<4x256xf32> -> vector<4x256xf32>
    %289 = vector.extract_strided_slice %273 {offsets = [2, 0], sizes = [1, 256], strides = [1, 1]} : vector<16x256xf32> to vector<1x256xf32>
    %290 = vector.broadcast %289 : vector<1x256xf32> to vector<4x256xf32>
    %291 = arith.mulf %290, %288 : vector<4x256xf32>
    %292 = arith.addf %286, %291 : vector<4x256xf32>
    %293 = vector.extract_strided_slice %5 {offsets = [0, 48], sizes = [4, 16], strides = [1, 1]} : vector<4x256xf32> to vector<4x16xf32>
    %cst_88 = arith.constant dense<0.000000e+00> : vector<4x256xf32>
    %294 = tpu.matmul %293, %257, %cst_88 {dimension_numbers = #tpu.dot_dimension_numbers<[1], [0], [0], [1], [0, 0, 1, 1], [], []>} : vector<4x16xf32>, vector<16x256xf32>, vector<4x256xf32> -> vector<4x256xf32>
    %295 = vector.extract_strided_slice %273 {offsets = [3, 0], sizes = [1, 256], strides = [1, 1]} : vector<16x256xf32> to vector<1x256xf32>
    %296 = vector.broadcast %295 : vector<1x256xf32> to vector<4x256xf32>
    %297 = arith.mulf %296, %294 : vector<4x256xf32>
    %298 = arith.addf %292, %297 : vector<4x256xf32>
    %299 = vector.extract_strided_slice %5 {offsets = [0, 64], sizes = [4, 16], strides = [1, 1]} : vector<4x256xf32> to vector<4x16xf32>
    %cst_89 = arith.constant dense<0.000000e+00> : vector<4x256xf32>
    %300 = tpu.matmul %299, %257, %cst_89 {dimension_numbers = #tpu.dot_dimension_numbers<[1], [0], [0], [1], [0, 0, 1, 1], [], []>} : vector<4x16xf32>, vector<16x256xf32>, vector<4x256xf32> -> vector<4x256xf32>
    %301 = vector.extract_strided_slice %273 {offsets = [4, 0], sizes = [1, 256], strides = [1, 1]} : vector<16x256xf32> to vector<1x256xf32>
    %302 = vector.broadcast %301 : vector<1x256xf32> to vector<4x256xf32>
    %303 = arith.mulf %302, %300 : vector<4x256xf32>
    %304 = arith.addf %298, %303 : vector<4x256xf32>
    %305 = vector.extract_strided_slice %5 {offsets = [0, 80], sizes = [4, 16], strides = [1, 1]} : vector<4x256xf32> to vector<4x16xf32>
    %cst_90 = arith.constant dense<0.000000e+00> : vector<4x256xf32>
    %306 = tpu.matmul %305, %257, %cst_90 {dimension_numbers = #tpu.dot_dimension_numbers<[1], [0], [0], [1], [0, 0, 1, 1], [], []>} : vector<4x16xf32>, vector<16x256xf32>, vector<4x256xf32> -> vector<4x256xf32>
    %307 = vector.extract_strided_slice %273 {offsets = [5, 0], sizes = [1, 256], strides = [1, 1]} : vector<16x256xf32> to vector<1x256xf32>
    %308 = vector.broadcast %307 : vector<1x256xf32> to vector<4x256xf32>
    %309 = arith.mulf %308, %306 : vector<4x256xf32>
    %310 = arith.addf %304, %309 : vector<4x256xf32>
    %311 = vector.extract_strided_slice %5 {offsets = [0, 96], sizes = [4, 16], strides = [1, 1]} : vector<4x256xf32> to vector<4x16xf32>
    %cst_91 = arith.constant dense<0.000000e+00> : vector<4x256xf32>
    %312 = tpu.matmul %311, %257, %cst_91 {dimension_numbers = #tpu.dot_dimension_numbers<[1], [0], [0], [1], [0, 0, 1, 1], [], []>} : vector<4x16xf32>, vector<16x256xf32>, vector<4x256xf32> -> vector<4x256xf32>
    %313 = vector.extract_strided_slice %273 {offsets = [6, 0], sizes = [1, 256], strides = [1, 1]} : vector<16x256xf32> to vector<1x256xf32>
    %314 = vector.broadcast %313 : vector<1x256xf32> to vector<4x256xf32>
    %315 = arith.mulf %314, %312 : vector<4x256xf32>
    %316 = arith.addf %310, %315 : vector<4x256xf32>
    %317 = vector.extract_strided_slice %5 {offsets = [0, 112], sizes = [4, 16], strides = [1, 1]} : vector<4x256xf32> to vector<4x16xf32>
    %cst_92 = arith.constant dense<0.000000e+00> : vector<4x256xf32>
    %318 = tpu.matmul %317, %257, %cst_92 {dimension_numbers = #tpu.dot_dimension_numbers<[1], [0], [0], [1], [0, 0, 1, 1], [], []>} : vector<4x16xf32>, vector<16x256xf32>, vector<4x256xf32> -> vector<4x256xf32>
    %319 = vector.extract_strided_slice %273 {offsets = [7, 0], sizes = [1, 256], strides = [1, 1]} : vector<16x256xf32> to vector<1x256xf32>
    %320 = vector.broadcast %319 : vector<1x256xf32> to vector<4x256xf32>
    %321 = arith.mulf %320, %318 : vector<4x256xf32>
    %322 = arith.addf %316, %321 : vector<4x256xf32>
    %323 = vector.extract_strided_slice %5 {offsets = [0, 128], sizes = [4, 16], strides = [1, 1]} : vector<4x256xf32> to vector<4x16xf32>
    %cst_93 = arith.constant dense<0.000000e+00> : vector<4x256xf32>
    %324 = tpu.matmul %323, %257, %cst_93 {dimension_numbers = #tpu.dot_dimension_numbers<[1], [0], [0], [1], [0, 0, 1, 1], [], []>} : vector<4x16xf32>, vector<16x256xf32>, vector<4x256xf32> -> vector<4x256xf32>
    %325 = vector.extract_strided_slice %273 {offsets = [8, 0], sizes = [1, 256], strides = [1, 1]} : vector<16x256xf32> to vector<1x256xf32>
    %326 = vector.broadcast %325 : vector<1x256xf32> to vector<4x256xf32>
    %327 = arith.mulf %326, %324 : vector<4x256xf32>
    %328 = arith.addf %322, %327 : vector<4x256xf32>
    %329 = vector.extract_strided_slice %5 {offsets = [0, 144], sizes = [4, 16], strides = [1, 1]} : vector<4x256xf32> to vector<4x16xf32>
    %cst_94 = arith.constant dense<0.000000e+00> : vector<4x256xf32>
    %330 = tpu.matmul %329, %257, %cst_94 {dimension_numbers = #tpu.dot_dimension_numbers<[1], [0], [0], [1], [0, 0, 1, 1], [], []>} : vector<4x16xf32>, vector<16x256xf32>, vector<4x256xf32> -> vector<4x256xf32>
    %331 = vector.extract_strided_slice %273 {offsets = [9, 0], sizes = [1, 256], strides = [1, 1]} : vector<16x256xf32> to vector<1x256xf32>
    %332 = vector.broadcast %331 : vector<1x256xf32> to vector<4x256xf32>
    %333 = arith.mulf %332, %330 : vector<4x256xf32>
    %334 = arith.addf %328, %333 : vector<4x256xf32>
    %335 = vector.extract_strided_slice %5 {offsets = [0, 160], sizes = [4, 16], strides = [1, 1]} : vector<4x256xf32> to vector<4x16xf32>
    %cst_95 = arith.constant dense<0.000000e+00> : vector<4x256xf32>
    %336 = tpu.matmul %335, %257, %cst_95 {dimension_numbers = #tpu.dot_dimension_numbers<[1], [0], [0], [1], [0, 0, 1, 1], [], []>} : vector<4x16xf32>, vector<16x256xf32>, vector<4x256xf32> -> vector<4x256xf32>
    %337 = vector.extract_strided_slice %273 {offsets = [10, 0], sizes = [1, 256], strides = [1, 1]} : vector<16x256xf32> to vector<1x256xf32>
    %338 = vector.broadcast %337 : vector<1x256xf32> to vector<4x256xf32>
    %339 = arith.mulf %338, %336 : vector<4x256xf32>
    %340 = arith.addf %334, %339 : vector<4x256xf32>
    %341 = vector.extract_strided_slice %5 {offsets = [0, 176], sizes = [4, 16], strides = [1, 1]} : vector<4x256xf32> to vector<4x16xf32>
    %cst_96 = arith.constant dense<0.000000e+00> : vector<4x256xf32>
    %342 = tpu.matmul %341, %257, %cst_96 {dimension_numbers = #tpu.dot_dimension_numbers<[1], [0], [0], [1], [0, 0, 1, 1], [], []>} : vector<4x16xf32>, vector<16x256xf32>, vector<4x256xf32> -> vector<4x256xf32>
    %343 = vector.extract_strided_slice %273 {offsets = [11, 0], sizes = [1, 256], strides = [1, 1]} : vector<16x256xf32> to vector<1x256xf32>
    %344 = vector.broadcast %343 : vector<1x256xf32> to vector<4x256xf32>
    %345 = arith.mulf %344, %342 : vector<4x256xf32>
    %346 = arith.addf %340, %345 : vector<4x256xf32>
    %347 = vector.extract_strided_slice %5 {offsets = [0, 192], sizes = [4, 16], strides = [1, 1]} : vector<4x256xf32> to vector<4x16xf32>
    %cst_97 = arith.constant dense<0.000000e+00> : vector<4x256xf32>
    %348 = tpu.matmul %347, %257, %cst_97 {dimension_numbers = #tpu.dot_dimension_numbers<[1], [0], [0], [1], [0, 0, 1, 1], [], []>} : vector<4x16xf32>, vector<16x256xf32>, vector<4x256xf32> -> vector<4x256xf32>
    %349 = vector.extract_strided_slice %273 {offsets = [12, 0], sizes = [1, 256], strides = [1, 1]} : vector<16x256xf32> to vector<1x256xf32>
    %350 = vector.broadcast %349 : vector<1x256xf32> to vector<4x256xf32>
    %351 = arith.mulf %350, %348 : vector<4x256xf32>
    %352 = arith.addf %346, %351 : vector<4x256xf32>
    %353 = vector.extract_strided_slice %5 {offsets = [0, 208], sizes = [4, 16], strides = [1, 1]} : vector<4x256xf32> to vector<4x16xf32>
    %cst_98 = arith.constant dense<0.000000e+00> : vector<4x256xf32>
    %354 = tpu.matmul %353, %257, %cst_98 {dimension_numbers = #tpu.dot_dimension_numbers<[1], [0], [0], [1], [0, 0, 1, 1], [], []>} : vector<4x16xf32>, vector<16x256xf32>, vector<4x256xf32> -> vector<4x256xf32>
    %355 = vector.extract_strided_slice %273 {offsets = [13, 0], sizes = [1, 256], strides = [1, 1]} : vector<16x256xf32> to vector<1x256xf32>
    %356 = vector.broadcast %355 : vector<1x256xf32> to vector<4x256xf32>
    %357 = arith.mulf %356, %354 : vector<4x256xf32>
    %358 = arith.addf %352, %357 : vector<4x256xf32>
    %359 = vector.extract_strided_slice %5 {offsets = [0, 224], sizes = [4, 16], strides = [1, 1]} : vector<4x256xf32> to vector<4x16xf32>
    %cst_99 = arith.constant dense<0.000000e+00> : vector<4x256xf32>
    %360 = tpu.matmul %359, %257, %cst_99 {dimension_numbers = #tpu.dot_dimension_numbers<[1], [0], [0], [1], [0, 0, 1, 1], [], []>} : vector<4x16xf32>, vector<16x256xf32>, vector<4x256xf32> -> vector<4x256xf32>
    %361 = vector.extract_strided_slice %273 {offsets = [14, 0], sizes = [1, 256], strides = [1, 1]} : vector<16x256xf32> to vector<1x256xf32>
    %362 = vector.broadcast %361 : vector<1x256xf32> to vector<4x256xf32>
    %363 = arith.mulf %362, %360 : vector<4x256xf32>
    %364 = arith.addf %358, %363 : vector<4x256xf32>
    %365 = vector.extract_strided_slice %5 {offsets = [0, 240], sizes = [4, 16], strides = [1, 1]} : vector<4x256xf32> to vector<4x16xf32>
    %cst_100 = arith.constant dense<0.000000e+00> : vector<4x256xf32>
    %366 = tpu.matmul %365, %257, %cst_100 {dimension_numbers = #tpu.dot_dimension_numbers<[1], [0], [0], [1], [0, 0, 1, 1], [], []>} : vector<4x16xf32>, vector<16x256xf32>, vector<4x256xf32> -> vector<4x256xf32>
    %367 = vector.extract_strided_slice %273 {offsets = [15, 0], sizes = [1, 256], strides = [1, 1]} : vector<16x256xf32> to vector<1x256xf32>
    %368 = vector.broadcast %367 : vector<1x256xf32> to vector<4x256xf32>
    %369 = arith.mulf %368, %366 : vector<4x256xf32>
    %370 = arith.addf %364, %369 : vector<4x256xf32>
    %371 = vector.broadcast %223 : vector<1x256xf32> to vector<4x256xf32>
    %372 = arith.mulf %371, %370 : vector<4x256xf32>
    %373 = arith.addf %372, %5 : vector<4x256xf32>
    %c0_101 = arith.constant 0 : index
    %c0_102 = arith.constant 0 : index
    %c0_103 = arith.constant 0 : index
    %374 = vector.load %arg9[%c0_101, %c0_102, %c0_103] : memref<1x4x256xf32, #tpu.memory_space<vmem>>, vector<1x4x256xf32>
    %375 = vector.shape_cast %374 : vector<1x4x256xf32> to vector<4x256xf32>
    %376 = vector.shape_cast %373 : vector<4x256xf32> to vector<1x4x256xf32>
    tpu.vector_store %arg9[%c0_101, %c0_102, %c0_103], %376 {strides = array<i32>} : memref<1x4x256xf32, #tpu.memory_space<vmem>>, vector<1x4x256xf32>,
    return
  }
  func.func @transform_0(%arg0: i32) -> (i32, i32, i32) {
    %c0_i32 = arith.constant 0 : i32
    %c0_i32_0 = arith.constant 0 : i32
    %c0_i32_1 = arith.constant 0 : i32
    return %arg0, %c0_i32, %c0_i32_0 : i32, i32, i32
  }
  func.func @transform_1(%arg0: i32) -> (i32, i32, i32) {
    %c0_i32 = arith.constant 0 : i32
    %c0_i32_0 = arith.constant 0 : i32
    %c0_i32_1 = arith.constant 0 : i32
    return %arg0, %c0_i32, %c0_i32_0 : i32, i32, i32
  }
  func.func @transform_2(%arg0: i32) -> (i32, i32) {
    %c0_i32 = arith.constant 0 : i32
    %c0_i32_0 = arith.constant 0 : i32
    %c0_i32_1 = arith.constant 0 : i32
    return %c0_i32, %c0_i32_0 : i32, i32
  }
  func.func @transform_3(%arg0: i32) -> (i32, i32) {
    %c0_i32 = arith.constant 0 : i32
    %c0_i32_0 = arith.constant 0 : i32
    %c0_i32_1 = arith.constant 0 : i32
    return %c0_i32, %c0_i32_0 : i32, i32
  }
  func.func @transform_4(%arg0: i32) -> (i32, i32) {
    %c0_i32 = arith.constant 0 : i32
    %c0_i32_0 = arith.constant 0 : i32
    %c0_i32_1 = arith.constant 0 : i32
    return %c0_i32, %c0_i32_0 : i32, i32
  }
  func.func @transform_5(%arg0: i32) -> (i32, i32) {
    %c0_i32 = arith.constant 0 : i32
    %c0_i32_0 = arith.constant 0 : i32
    %c0_i32_1 = arith.constant 0 : i32
    return %c0_i32, %c0_i32_0 : i32, i32
  }
  func.func @transform_6(%arg0: i32) -> (i32, i32) {
    %c0_i32 = arith.constant 0 : i32
    %c0_i32_0 = arith.constant 0 : i32
    %c0_i32_1 = arith.constant 0 : i32
    return %c0_i32, %c0_i32_0 : i32, i32
  }
  func.func @transform_7(%arg0: i32) -> (i32, i32) {
    %c0_i32 = arith.constant 0 : i32
    %c0_i32_0 = arith.constant 0 : i32
    %c0_i32_1 = arith.constant 0 : i32
    return %c0_i32, %c0_i32_0 : i32, i32
  }
  func.func @transform_8(%arg0: i32) -> (i32, i32, i32) {
    %c0_i32 = arith.constant 0 : i32
    %c0_i32_0 = arith.constant 0 : i32
    %c0_i32_1 = arith.constant 0 : i32
    return %arg0, %c0_i32, %c0_i32_0 : i32, i32, i32
  }
}

</mosaic_0001>

<bundles_post_ra>
// kernel: tpu_custom_call.1
= control target key start
LH: loop header
LB: loop body
LE: loop exit
PB: predicated region body
PF: predicated region fallthrough
CT: control target
= control target key end

     0   :  { %13 = vsyncpa [#allocation4], 0  ;;  %s3903_s0 = inlined_call_operand.vmem [shape: f32[2,4,256], index: 0, kind: input, shape index: {}]   ;;  %s3904_s1 = inlined_call_operand.vmem [shape: f32[2,32,8], index: 1, kind: input, shape index: {}]   ;;  %s3905_s2 = inlined_call_operand.vmem [shape: f32[4,4], index: 2, kind: input, shape index: {}]   ;;  %s3906_s3 = inlined_call_operand.vmem [shape: f32[4,4], index: 3, kind: input, shape index: {}]   ;;  %s3907_s4 = inlined_call_operand.vmem [shape: f32[8,16], index: 4, kind: input, shape index: {}]   ;;  %s3908_s5 = inlined_call_operand.vmem [shape: f32[27,8], index: 5, kind: input, shape index: {}]   ;;  %s3909_s6 = inlined_call_operand.vmem [shape: f32[2,256], index: 6, kind: input, shape index: {}]   ;;  %s3910_s7 = inlined_call_operand.vmem [shape: f32[9,256], index: 7, kind: input, shape index: {}]   ;;  %s3911_s8 = inlined_call_operand.hbm [shape: f32[2,4,256], index: 8, kind: output, shape index: {}]  }
   0x1   :  { %15 = vsyncpa [#allocation4 + $0x1], 0  ;;  %s3279_s27 = smov 0   ;;  %s3281_s28 = smov 0  }
   0x2   :  { %s3283_s29 = smov 0   ;;  %s3285_s30 = smov 0  }
   0x3 LB: > { %s3300_s9 = sadd.s32 4294967295, %s3215_s30   ;;  %s2939_s10 = sadd.s32 4294967294, %s3215_s30   ;;  %s3215_s30 = sphi %s3285_s30, %s3926_s30   ;;  %s3211_s29 = sphi %s3283_s29, %s3925_s29   ;;  %s3207_s28 = sphi %s3281_s28, %s3924_s28   ;;  %s3203_s27 = sphi %s3279_s27, %s3923_s27  }
   0x4   : > { %s3304_s11 = sadd.s32 1, %s3215_s30   ;;  %s206_s12 = sadd.s32 1, %s3211_s29 }
   0x5   : > { %s203_s13 = ssub.s32 %s3215_s30, %s3304_s11  ;;  %p216_p0 = scmp.ne.s32.totalorder %s3211_s29, %s3207_s28 }
   0x6   : > { %p204_p1 = scmp.eq.s32.totalorder %s203_s13, 0  ;;  %p217_p2 = scmp.eq.s32.totalorder %s3300_s9, 1 }
   0x7   : > { %p222_p3 = scmp.ne.s32.totalorder %s3207_s28, %s3203_s27  ;;  %p223_p4 = scmp.eq.s32.totalorder %s2939_s10, 1 }
   0x8   : > { %s3315_s14 = scalar_select %p204_p1, %s3211_s29, %s206_s12  }
   0x9   : > { %p3317_p5 = por %p217_p2, %p216_p0  ;;  %p3321_p6 = por %p223_p4, %p222_p3 }
   0xa   : > { %p2942_p7 = scmp.ge.s32.totalorder %s3215_s30, 1  ;;  %p275_p8 = scmp.lt.s32.totalorder %s3215_s30, 3 }
   0xc   : > { %p276_p9 = pnand %p2942_p7, %p275_p8 }
   0xd   : > { %v412_v0 = vld [vmem:[%s3907_s4] sm:$0xff] (!%p276_p9)  ;;  %p314_p10 = scmp.lt.s32.totalorder (!%p276_p9), %s3300_s9, 1  ;;  %vm413_vm0 = vcmask (!%p276_p9), 64512   ;;  %s3217_s24 = smov (!%p276_p9), 80   ;;  %vm516_vm1 = vcmask (!%p276_p9), 125952   ;;  %vm336_vm2 = vcmask (!%p276_p9), 1043456  }
   0xe   : > { %279 = sbr.rel (%p276_p9) target bundleno = 1293 (0x50d), region = 52  ;;  %3004 = vmatprep.subr.mxu1 (!%p276_p9), %v412_v0  ;;  %s3912_s25 = smov (!%p276_p9), 32   ;;  %vm332_vm3 = vcmask (!%p276_p9), 31744   ;;  %vm528_vm4 = vcmask (!%p276_p9), 257152   ;;  %vm540_vm5 = vcmask (!%p276_p9), 388352   ;;  %vm553_vm6 = vcmask (!%p276_p9), 519552  }
   0xf   : > { %3005 = vmatpush3.msra.mxu1 (!%p276_p9), %v412_v0  ;;  %s3219_s26 = smov (!%p276_p9), 16   ;;  %s3914_s12 = smov (!%p276_p9), 48   ;;  %vm566_vm7 = vcmask (!%p276_p9), 650752   ;;  %vm578_vm8 = vcmask (!%p276_p9), 781952   ;;  %vm590_vm9 = vcmask (!%p276_p9), 913152   ;;  %vm603_vm10 = vcmask (!%p276_p9), 1044352  }
  0x10   : > { %s3225_s21 = smov (!%p276_p9), 124   ;;  %s3228_s13 = smov (!%p276_p9), 1   ;;  %vm1028_vm11 = vcmask (!%p276_p9), 130048   ;;  %vm1063_vm12 = vcmask (!%p276_p9), 121856   ;;  %vm1006_vm13 = vcmask (!%p276_p9), 138240   ;;  %vm1088_vm14 = vcmask (!%p276_p9), 1041408  }
  0x11   : > { %s3229_s17 = smov (!%p276_p9), 127   ;;  %s3920_s22 = smov (!%p276_p9), 64   ;;  %vm1104_vm15 = vcmask (!%p276_p9), 7168  }
  0x15   : > { %s3332_s19 = scalar_select %p314_p10, %s3300_s9, 1 }
  0x17   : > { %s2997_s20 = sshll.u32 %s3332_s19, 5  ;;  %s2996_s10 = sshll.u32 %s3332_s19, 3 }
  0x18   : > { %s323_s23 = scalar_lea.vmem %s3904_s1, %s2997_s20  ;;  %s318_s18 = scalar_lea.vmem %s3903_s0, %s2996_s10 }
  0x19   : > { %v325_v1 = vld [vmem:[%s323_s23] sm:$0xff]  ;;  %v326_v2 = vld [vmem:[%s323_s23 + $0x8] sm:$0xff]  ;;  %v327_v3 = vld [vmem:[%s323_s23 + $0x10] sm:$0xff]  ;;  %s3221_s20 = smov 96   ;;  %s3916_s19 = smov 64  }
  0x1a   : > { %3006 = vmatprep.mubr.msk.f32.mxu1 %vm413_vm0, %v325_v1  ;;  %v328_v4 = vld [vmem:[%s323_s23 + $0x18] sm:$0xff]  ;;  %v324_v57 = vld [vmem:[%s318_s18] sm:$0xff]  ;;  %s3224_s23 = smov 112   ;;  %s3227_s10 = smov 17  }
  0x1b   : > { %3007 = vmatmul.mubr.msk.f32.vlgmr.msra.gmra.mrb[0].mxu1 %vm413_vm0, %v326_v2  ;;  %v331_v1 = vcombine.high %v324_v57, %v324_v57  ;;  %s3230_s18 = smov 113  }
  0x1c   : > { %3009 = vmatprep.mubr.msk.f32.mxu1 %vm413_vm0, %v327_v3  ;;  %v329_v3 = vld [vmem:[%s3905_s2] sm:$0xf] }
  0x1d   : > { %2948 = vmatprep.subr.msk.mxu0 %vm336_vm2, %v331_v1 }
  0x1e   : > { %2949 = vmatpush1.msk.msra.mxu0 %vm336_vm2, %v324_v57 }
  0x1f   : > { %3010 = vmatmul.mubr.msk.f32.gmra.mrb[2].mxu1 %vm413_vm0, %v328_v4  ;;  %vm1155_vm0 = vcmask 1039360  }
  0xee   : > { %v3338_v5 = vpop.f32.mrb[0].mxu1 }
  0xef   : > { %v3340_v6 = vpop.f32.mrb[1].mxu1  ;;  %v569_v7 = vmul.f32 0.33333334, %v3338_v5  ;;  %v568_v8 = vmul.f32 0.6666667, %v3338_v5 }
  0xf0   : > { %v531_v9 = vmul.f32 0.93333334, %v3340_v6  ;;  %v530_v11 = vmul.f32 0.06666667, %v3340_v6  ;;  %v519_v12 = vmul.f32 0.46666667, %v3340_v6 }
  0xf1   : > { %v571_v10 = vrot.slane %v569_v7, 4  ;;  %v542_v15 = vmul.f32 0.6, %v3340_v6  ;;  %v543_v16 = vmul.f32 0.4, %v3338_v5  ;;  %v511_v40 = vmul.f32 0.0, %v3340_v6 }
  0xf2   : > { %v3347_v13 = vpop.f32.mrb[2].mxu1  ;;  %v533_v14 = vrot.slane %v531_v9, 4  ;;  %v521_v19 = vrot.slane %v519_v12, 4  ;;  %v518_v23 = vmul.f32 0.53333336, %v3340_v6 }
  0xf3   : > { %v502_v17 = vpop.f32.mrb[3].mxu1  ;;  %v573_v18 = vadd.f32 %v571_v10, %v568_v8  ;;  %v661_v20 = vmul.f32 0.93333334, %v3347_v13  ;;  %v662_v21 = vmul.f32 0.06666667, %v3347_v13  ;;  %v545_v24 = vrot.slane %v543_v16, 4 }
  0xf4   : > { %v535_v22 = vadd.f32 %v533_v14, %v530_v11  ;;  %v673_v25 = vmul.f32 0.53333336, %v3347_v13  ;;  %v555_v27 = vmul.f32 0.13333334, %v3340_v6  ;;  %v556_v28 = vmul.f32 0.8666667, %v3338_v5 }
  0xf5   : > { %575 = vrot.lane.b32.xlu0 %v573_v18, %s3217_s24  ;;  %v664_v26 = vrot.slane %v662_v21, 4  ;;  %v547_v29 = vadd.f32 %v545_v24, %v542_v15  ;;  %v672_v30 = vmul.f32 0.46666667, %v3347_v13  ;;  %v523_v31 = vadd.f32 %v521_v19, %v518_v23  ;;  %v3412_v19 = vld [vmem:[%s3908_s5 + $0x10] sm:$0xff] }
  0xf6   : > { %537 = vrot.lane.b32.xlu1 %v535_v22, %s3912_s25  ;;  %v675_v33 = vrot.slane %v673_v25, 4  ;;  %v558_v34 = vrot.slane %v556_v28, 4  ;;  %v627_v35 = vmul.f32 0.6666667, %v502_v17  ;;  %v637_v36 = vmul.f32 0.8666667, %v502_v17 }
  0xf7   : > { %v666_v32 = vadd.f32 %v664_v26, %v661_v20  ;;  %v638_v37 = vmul.f32 0.13333334, %v3347_v13  ;;  %v616_v39 = vmul.f32 0.2, %v502_v17  ;;  %v649_v42 = vmul.f32 0.4, %v502_v17 }
  0xf8   : > { %v560_v38 = vadd.f32 %v558_v34, %v555_v27  ;;  %v650_v43 = vmul.f32 0.6, %v3347_v13  ;;  %v549_v44 = vcombine.high %v547_v29, %v547_v29  ;;  %v677_v45 = vadd.f32 %v675_v33, %v672_v30  ;;  %v3417_v20 = vld [vmem:[%s3908_s5 + $0x18] sm:$0x7] }
  0xf9   : > { %525 = vrot.lane.b32.xlu0 %v523_v31, %s3219_s26  ;;  %v640_v41 = vrot.slane %v638_v37, 4  ;;  %v629_v46 = vrot.slane %v627_v35, 4  ;;  %v593_v49 = vmul.f32 0.26666668, %v502_v17  ;;  %v626_v50 = vmul.f32 0.33333334, %v502_v17 }
  0xfa   : > { %668 = vrot.lane.b32.xlu1 %v666_v32, %s3217_s24  ;;  %v652_v48 = vrot.slane %v650_v43, 4  ;;  %v615_v51 = vmul.f32 0.8, %v502_v17  ;;  %v513_v52 = vrot.slane %v511_v40, 4  ;;  %v618_v53 = vrot.slane %v616_v39, 4 }
  0xfb   : > { %v642_v47 = vadd.f32 %v640_v41, %v637_v36  ;;  %v592_v55 = vmul.f32 0.73333335, %v3338_v5  ;;  %v595_v56 = vrot.slane %v593_v49, 4  ;;  %v562_v58 = vcombine.high %v560_v38, %v560_v38  ;;  %v691_v37 = vld [vmem:[%s3906_s3] sm:$0xf] }
  0xfc   : > { %v654_v54 = vadd.f32 %v652_v48, %v649_v42  ;;  %v581_v59 = vmul.f32 0.8, %v3338_v5  ;;  %v515_v60 = vadd.f32 %v513_v52, %v3340_v6  ;;  %v606_v61 = vmul.f32 0.73333335, %v502_v17 }
  0xfd   : > { %550 = vrot.lane.b32.xlu0 %v549_v44, %s3914_s12  ;;  %v631_v62 = vadd.f32 %v629_v46, %v626_v50  ;;  %v597_v63 = vadd.f32 %v595_v56, %v592_v55  ;;  %v605_v0 = vmul.f32 0.26666668, %v3338_v5  ;;  %v620_v4 = vadd.f32 %v618_v53, %v615_v51 }
  0xfe   : > { %679 = vrot.lane.b32.xlu1 %v677_v45, %s3221_s20  ;;  %517 = vst.msk [vmem:[#allocation2] sm:$0xf] %vm516_vm1, %v515_v60  ;;  %v608_v2 = vrot.slane %v606_v61, 4  ;;  %v583_v6 = vrot.slane %v581_v59, 4  ;;  %v3223_v8 = vmov 0.0   ;;  %v644_v9 = vcombine.high %v642_v47, %v642_v47  ;;  %v3511_v59 = vld [vmem:[%s3910_s7] sm:$0xff] }
  0xff   : > { %405 = vmatprep.mubr.f32.mxu0 %v3223_v8  ;;  %v683_v10 = vmul.f32 0.0, %v3347_v13  ;;  %1514 = vmatprep.mubr.f32.mxu1 %v3223_v8  ;;  %v580_v11 = vmul.f32 0.2, %v3338_v5  ;;  %v656_v15 = vcombine.high %v654_v54, %v654_v54  ;;  %v599_v17 = vcombine.high %v597_v63, %v597_v63  ;;  %v3400_v5 = vld [vmem:[%s3908_s5] sm:$0xff]  ;;  %v3516_v60 = vld [vmem:[%s3910_s7 + $0x8] sm:$0xff] }
 0x100   : > { %v610_v7 = vadd.f32 %v608_v2, %v605_v0  ;;  %2950 = vmatmul.mubr.msk.f32.vlgmr.msra.gmra.mrb[0].mxu0 %vm332_vm3, %v329_v3  ;;  %v1011_v54 = vlaneseq }
 0x101   : > { %563 = vrot.lane.b32.xlu0 %v562_v58, %s3916_s19  ;;  %766 = vmatprep.mubr.f32.mxu0 %v3223_v8  ;;  %v585_v14 = vadd.f32 %v583_v6, %v580_v11  ;;  %v684_v16 = vadd.f32 %v3347_v13, %v683_v10  ;;  %v3405_v13 = vld [vmem:[%s3908_s5 + $0x8] sm:$0xff] }
 0x102   : > { %633 = vrot.lane.b32.xlu1 %v631_v62, %s3912_s25  ;;  %v612_v12 = vcombine.high %v610_v7, %v610_v7  ;;  %s3921_s25 = smov 48   ;;  %v3503_v55 = vshrl.u32 %v1011_v54, 7 }
 0x103   : > { %v686_v18 = vcombine.high %v684_v16, %v684_v16 }
 0x104   : > { %614 = vst.msk [vmem:[#allocation2 + $0x4] sm:$0xf] %vm516_vm1, %v612_v12  ;;  %v3506_v58 = vsub.s32 4, %v3503_v55  ;;  %v3519_v63 = vsub.s32 1, %v3503_v55  ;;  %v3526_v2 = vsub.s32 2, %v3503_v55  ;;  %v3529_v6 = vsub.s32 0, %v3503_v55 }
 0x105   : > { %622 = vrot.lane.b32.xlu0 %v620_v4, %s3219_s26  ;;  %vm1182_vm1 = vcmask 1040384  }
 0x106   : > { %645 = vrot.lane.b32.xlu1 %v644_v9, %s3914_s12  ;;  %s3922_s12 = smov 32   ;;  %v1130_v0 = vrot.slane %v3511_v59, %v3506_v58  ;;  %v1134_v1 = vrot.slane %v3516_v60, %v3506_v58  ;;  %v1036_v7 = vrot.slane %v3511_v59, %v3519_v63  ;;  %v1040_v9 = vrot.slane %v3516_v60, %v3519_v63 }
 0x107   : > { %v1075_v12 = vrot.slane %v3511_v59, %v3526_v2  ;;  %v1079_v16 = vrot.slane %v3516_v60, %v3526_v2 }
 0x109   : > { %587 = vrot.lane.b32.xlu0 %v585_v14, %s3221_s20 }
 0x10a   : > { %657 = vrot.lane.b32.xlu1 %v656_v15, %s3916_s19  ;;  %s3226_s19 = smov 15  }
 0x10d   : > { %600 = vrot.lane.b32.xlu0 %v599_v17, %s3224_s23  ;;  %v3547_v17 = vsub.s32 3, %v3503_v55 }
 0x10e   : > { %687 = vrot.lane.b32.xlu1 %v686_v18, %s3224_s23 }
 0x111   : > { %781 = vrot.lane.b32.xlu0 %v3400_v5, %s3225_s21 }
 0x112   : > { %783 = vrot.lane.b32.xlu1 %v3405_v13, %s3225_s21 }
 0x115   : > { %785 = vrot.lane.b32.xlu0 %v3412_v19, %s3225_s21 }
 0x116   : > { %787 = vrot.lane.b32.xlu1 %v3417_v20, %s3225_s21  ;;  %s3231_s21 = smov 111  }
 0x167   : > { %v576_v21 = vpop.permute.xlu0 %575 }
 0x168   : > { %v538_v22 = vpop.permute.xlu1 %537 }
 0x16b   : > { %v526_v23 = vpop.permute.xlu0 %525 }
 0x16c   : > { %529 = vst.msk [vmem:[#allocation2] sm:$0xf] %vm528_vm4, %v526_v23  ;;  %v669_v24 = vpop.permute.xlu1 %668 }
 0x16d   : > { %541 = vst.msk [vmem:[#allocation2] sm:$0xf] %vm540_vm5, %v538_v22 }
 0x16f   : > { %v551_v25 = vpop.permute.xlu0 %550 }
 0x170   : > { %554 = vst.msk [vmem:[#allocation2] sm:$0xf] %vm553_vm6, %v551_v25  ;;  %v680_v26 = vpop.permute.xlu1 %679 }
 0x173   : > { %v564_v27 = vpop.permute.xlu0 %563 }
 0x174   : > { %567 = vst.msk [vmem:[#allocation2] sm:$0xf] %vm566_vm7, %v564_v27  ;;  %v634_v28 = vpop.permute.xlu1 %633 }
 0x175   : > { %579 = vst.msk [vmem:[#allocation2] sm:$0xf] %vm578_vm8, %v576_v21 }
 0x177   : > { %v623_v29 = vpop.permute.xlu0 %622 }
 0x178   : > { %625 = vst.msk [vmem:[#allocation2 + $0x4] sm:$0xf] %vm528_vm4, %v623_v29  ;;  %v646_v30 = vpop.permute.xlu1 %645  ;;  %vm1255_vm4 = vcmask 908288  }
 0x179   : > { %636 = vst.msk [vmem:[#allocation2 + $0x4] sm:$0xf] %vm540_vm5, %v634_v28 }
 0x17a   : > { %648 = vst.msk [vmem:[#allocation2 + $0x4] sm:$0xf] %vm553_vm6, %v646_v30 }
 0x17b   : > { %v588_v31 = vpop.permute.xlu0 %587 }
 0x17c   : > { %591 = vst.msk [vmem:[#allocation2] sm:$0xf] %vm590_vm9, %v588_v31  ;;  %v658_v32 = vpop.permute.xlu1 %657  ;;  %v1112_v31 = vrot.slane %v3511_v59, %v3547_v17 }
 0x17d   : > { %660 = vst.msk [vmem:[#allocation2 + $0x4] sm:$0xf] %vm566_vm7, %v658_v32 }
 0x17e   : > { %671 = vst.msk [vmem:[#allocation2 + $0x4] sm:$0xf] %vm578_vm8, %v669_v24  ;;  %v3556_v24 = vsub.s32 5, %v3503_v55 }
 0x17f   : > { %682 = vst.msk [vmem:[#allocation2 + $0x4] sm:$0xf] %vm590_vm9, %v680_v26  ;;  %v601_v33 = vpop.permute.xlu0 %600 }
 0x180   : > { %604 = vst.msk [vmem:[#allocation2] sm:$0xf] %vm603_vm10, %v601_v33  ;;  %v688_v34 = vpop.permute.xlu1 %687 }
 0x181   : > { %690 = vst.msk [vmem:[#allocation2 + $0x4] sm:$0xf] %vm603_vm10, %v688_v34 }
 0x183   : > { %v782_v40 = vpop.permute.xlu0 %781 }
 0x184   : > { %v784_v41 = vpop.permute.xlu1 %783 }
 0x187   : > { %v786_v42 = vpop.permute.xlu0 %785 }
 0x188   : > { %v692_v35 = vld [vmem:[#allocation2] sm:$0xff]  ;;  %v788_v43 = vpop.permute.xlu1 %787 }
 0x189   : > { %v694_v36 = vcombine.high %v692_v35, %v692_v35 }
 0x18b   : > { %2955 = vmatprep.subr.msk.mxu0 %vm336_vm2, %v694_v36  ;;  %v1116_v36 = vrot.slane %v3516_v60, %v3547_v17 }
 0x18c   : > { %2956 = vmatpush1.msk.msra.mxu0 %vm336_vm2, %v692_v35 }
 0x18d   : > { %2957 = vmatmul.mubr.msk.f32.vlgmr.msra.gmra.mrb[2].mxu0 %vm332_vm3, %v691_v37 }
 0x18e   : > { %867 = vmatprep.mubr.f32.mxu0 %v3223_v8 }
 0x1d3   : > { %v3436_v38 = vpop.f32.mrb[0].mxu0 }
 0x1d4   : > { %v3438_v39 = vpop.f32.mrb[1].mxu0 }
 0x1d5   : > { %2958 = vmatprep.subr.msk.mxu0 %vm336_vm2, %v3438_v39 }
 0x1d6   : > { %2959 = vmatpush1.msk.msra.mxu0 %vm336_vm2, %v3436_v38 }
 0x1d7   : > { %2960 = vmatmul.mubr.msk.f32.vlgmr.msra.gmra.mrb[4].mxu0 %vm332_vm3, %v782_v40 }
 0x1d8   : > { %873 = vmatprep.mubr.f32.mxu0 %v3223_v8 }
 0x1db   : > { %2961 = vmatmul.mubr.msk.f32.gmra.mrb[6].mxu0 %vm332_vm3, %v784_v41  ;;  %v1169_v41 = vrot.slane %v3511_v59, %v3556_v24 }
 0x1dc   : > { %879 = vmatprep.mubr.f32.mxu0 %v3223_v8 }
 0x1df   : > { %2962 = vmatmul.mubr.msk.f32.gmra.mrb[8].mxu0 %vm332_vm3, %v786_v42  ;;  %v1173_v42 = vrot.slane %v3516_v60, %v3556_v24 }
 0x1e0   : > { %885 = vmatprep.mubr.f32.mxu0 %v3223_v8 }
 0x1e3   : > { %2963 = vmatmul.mubr.msk.f32.gmra.mrb[10].mxu0 %vm332_vm3, %v788_v43 }
 0x1e4   : > { %970 = vmatprep.mubr.f32.mxu0 %v3223_v8 }
 0x260   : > { %v768_v44 = vpop.f32.mrb[2].mxu0 }
 0x261   : > { %v770_v45 = vpop.f32.mrb[3].mxu0 }
 0x262   : > { %2964 = vmatprep.subr.msk.mxu0 %vm336_vm2, %v770_v45 }
 0x263   : > { %2965 = vmatpush1.msk.msra.mxu0 %vm336_vm2, %v768_v44  ;;  %vm1197_vm2 = vcmask 924672  }
 0x264   : > { %2966 = vmatmul.mubr.msk.f32.vlgmr.msra.gmra.mrb[4].mxu0 %vm332_vm3, %v3400_v5 }
 0x265   : > { %976 = vmatprep.mubr.f32.mxu0 %v3223_v8 }
 0x268   : > { %2967 = vmatmul.mubr.msk.f32.gmra.mrb[6].mxu0 %vm332_vm3, %v3405_v13  ;;  %v1014_v13 = vrot.slane %v3511_v59, %v3529_v6 }
 0x269   : > { %982 = vmatprep.mubr.f32.mxu0 %v3223_v8 }
 0x26c   : > { %2968 = vmatmul.mubr.msk.f32.gmra.mrb[8].mxu0 %vm332_vm3, %v3412_v19  ;;  %v1018_v19 = vrot.slane %v3516_v60, %v3529_v6 }
 0x26d   : > { %988 = vmatprep.mubr.f32.mxu0 %v3223_v8 }
 0x270   : > { %2969 = vmatmul.mubr.msk.f32.gmra.mrb[10].mxu0 %vm332_vm3, %v3417_v20  ;;  %vm1225_vm3 = vcmask 916480  }
 0x271   : > { %2208 = vmatprep.mubr.f32.mxu0 %v3223_v8 }
 0x337   : > { %v972_v46 = vpop.f32.mrb[4].mxu0 }
 0x338   : > { %1059 = vrot.lane.b32.xlu0 %v972_v46, %s3226_s19  ;;  %1026 = vrot.lane.b32.xlu1 %v972_v46, %s3219_s26  ;;  %v974_v47 = vpop.f32.mrb[5].mxu0 }
 0x33b   : > { %v3467_v48 = vpop.f32.mrb[6].mxu0 }
 0x33c   : > { %1004 = vrot.lane.b32.xlu1 %v972_v46, %s3227_s10  ;;  %1023 = vrot.lane.b32.xlu0 %v974_v47, %s3219_s26  ;;  %v980_v49 = vpop.f32.mrb[7].mxu0  ;;  %v3536_v10 = vmul.f32 %v1130_v0, %v3467_v48 }
 0x33d   : > { %v3538_v11 = vmul.f32 %v1134_v1, %v980_v49 }
 0x33e   : > { %v1139_v25 = vrot.slane %v3536_v10, 4 }
 0x33f   : > { %v984_v50 = vpop.f32.mrb[8].mxu0  ;;  %v1140_v26 = vrot.slane %v3538_v11, 4 }
 0x340   : > { %1052 = vrot.lane.b32.xlu0 %v974_v47, %s3226_s19  ;;  %1061 = vrot.lane.b32.xlu1 %v3467_v48, %s3226_s19  ;;  %v986_v51 = vpop.f32.mrb[9].mxu0 }
 0x343   : > { %v990_v52 = vpop.f32.mrb[10].mxu0 }
 0x344   : > { %1000 = vrot.lane.b32.xlu0 %v974_v47, %s3227_s10  ;;  %1102 = vrot.lane.b32.xlu1 %v3467_v48, %s3228_s13  ;;  %v992_v53 = vpop.f32.mrb[11].mxu0 }
 0x348   : > { %1147 = vrot.lane.b32.xlu0 %v3467_v48, %s3229_s17  ;;  %1054 = vrot.lane.b32.xlu1 %v980_v49, %s3226_s19 }
 0x34c   : > { %1099 = vrot.lane.b32.xlu0 %v980_v49, %s3228_s13  ;;  %1149 = vrot.lane.b32.xlu1 %v980_v49, %s3229_s17  ;;  %v3571_v49 = vsub.s32 6, %v3503_v55 }
 0x350   : > { %1151 = vrot.lane.b32.xlu0 %v984_v50, %s3229_s17  ;;  %1153 = vrot.lane.b32.xlu1 %v986_v51, %s3229_s17 }
 0x354   : > { %1193 = vrot.lane.b32.xlu0 %v984_v50, %s3230_s18  ;;  %1195 = vrot.lane.b32.xlu1 %v986_v51, %s3230_s18 }
 0x358   : > { %1221 = vrot.lane.b32.xlu0 %v984_v50, %s3224_s23  ;;  %1223 = vrot.lane.b32.xlu1 %v986_v51, %s3224_s23  ;;  %v3574_v50 = vsub.s32 7, %v3503_v55 }
 0x35c   : > { %1251 = vrot.lane.b32.xlu0 %v990_v52, %s3231_s21  ;;  %1253 = vrot.lane.b32.xlu1 %v992_v53, %s3231_s21 }
 0x360   : > { %1533 = vrot.lane.b32.xlu0 %v3436_v38, %s3224_s23  ;;  %1620 = vrot.lane.b32.xlu1 %v3436_v38, %s3221_s20 }
 0x364   : > { %1707 = vrot.lane.b32.xlu0 %v3436_v38, %s3217_s24  ;;  %1794 = vrot.lane.b32.xlu1 %v3436_v38, %s3920_s22 }
 0x368   : > { %1881 = vrot.lane.b32.xlu0 %v3436_v38, %s3921_s25  ;;  %1968 = vrot.lane.b32.xlu1 %v3436_v38, %s3922_s12 }
 0x36c   : > { %2055 = vrot.lane.b32.xlu0 %v3436_v38, %s3219_s26  ;;  %2227 = vrot.lane.b32.xlu1 %v3438_v39, %s3224_s23 }
 0x370   : > { %2314 = vrot.lane.b32.xlu0 %v3438_v39, %s3221_s20  ;;  %2401 = vrot.lane.b32.xlu1 %v3438_v39, %s3217_s24  ;;  %s2998_s20 = sshll.u32 %s3300_s9, 7  ;;  %s3233_s9 = smov [#allocation3]  }
 0x371   : > { %s3861_s13 = scalar_lea.hbm %s3911_s8, %s2998_s20  ;;  %s3157_s21 = sshll.u32 %s3233_s9, 4  ;;  %s3158_s21 = int_to_ptr.vmem [resolvable:$false] %s3157_s21 }
 0x374   : > { %2488 = vrot.lane.b32.xlu0 %v3438_v39, %s3920_s22  ;;  %2575 = vrot.lane.b32.xlu1 %v3438_v39, %s3921_s25  ;;  %s3159_s22 = scalar_lea.vmem %s3158_s21, 256 }
 0x378   : > { %2662 = vrot.lane.b32.xlu0 %v3438_v39, %s3922_s12  ;;  %2749 = vrot.lane.b32.xlu1 %v3438_v39, %s3219_s26  ;;  %s311_s12 = sand.u32 1, %s3207_s28  }
 0x379   : > { %s2943_s24 = sshll.u32 %s311_s12, 3  ;;  %s2854_s17 = scalar_lea.sflag [#allocation4], %s311_s12 }
 0x37a   : > { %s313_s23 = scalar_lea.vmem [#allocation3], %s2943_s24 }
 0x37b   : > { %s2868_s19 = sshll.u32 %s313_s23, 4  ;;  %s3863_s19 = int_to_ptr.vmem [resolvable:$true] %s2868_s19 }
 0x37c   : > { %s3153_s18 = scalar_lea.vmem %s3863_s19, 128  ;;  %p3160_p0 = scmp.lt.s32.totalorder %s3863_s19, %s3158_s21 }
 0x37d   : > { %p3154_p11 = scmp.ne.s32.totalorder %s3863_s19, %s3153_s18  ;;  %p3161_p1 = scmp.lt.s32.totalorder %s3159_s22, %s3153_s18 }
 0x37f   : > { %p3155_p12 = pnand %p3154_p11, %p3317_p5  ;;  %p3162_p2 = por %p3161_p1, %p3160_p0 }
 0x381   : > { %p3156_p13 = pneg %p3155_p12 }
 0x383   : > { %p3163_p3 = pnand %p3162_p2, %p3156_p13 }
 0x3aa   : > { %v1060_v56 = vpop.permute.xlu0 %1059  ;;  %v1027_v57 = vpop.permute.xlu1 %1026 }
 0x3ae   : > { %v1005_v61 = vpop.permute.xlu1 %1004  ;;  %v1024_v62 = vpop.permute.xlu0 %1023 }
 0x3af   : > { %v1029_v14 = vsel %vm1028_vm11, %v1027_v57, %v1024_v62  ;;  %v1032_v15 = vsel %vm1028_vm11, %v1024_v62, %v1027_v57 }
 0x3b0   : > { %v1041_v27 = vmul.f32 %v1036_v7, %v1032_v15  ;;  %v1042_v28 = vmul.f32 %v1040_v9, %v1029_v14 }
 0x3b2   : > { %v1053_v3 = vpop.permute.xlu0 %1052  ;;  %v1062_v4 = vpop.permute.xlu1 %1061  ;;  %v1045_v43 = vrot.slane %v1041_v27, 3  ;;  %v1046_v44 = vrot.slane %v1042_v28, 3 }
 0x3b3   : > { %v1064_v18 = vsel %vm1063_vm12, %v1060_v56, %v1053_v3  ;;  %v1070_v5 = vsel %vm1063_vm12, %v1053_v3, %v1060_v56 }
 0x3b4   : > { %v1080_v29 = vmul.f32 %v1075_v12, %v1070_v5  ;;  %v1081_v30 = vmul.f32 %v1079_v16, %v1064_v18 }
 0x3b6   : > { %v1001_v20 = vpop.permute.xlu0 %1000  ;;  %v1103_v21 = vpop.permute.xlu1 %1102  ;;  %v1089_v47 = vrot.slane %v1080_v29, 6  ;;  %v1092_v48 = vrot.slane %v1081_v30, 6 }
 0x3b7   : > { %v1007_v22 = vsel %vm1006_vm13, %v1005_v61, %v1001_v20  ;;  %v1010_v23 = vsel %vm1006_vm13, %v1001_v20, %v1005_v61  ;;  %v1206_v20 = vrot.slane %v3511_v59, %v3571_v49 }
 0x3b8   : > { %v1019_v32 = vmul.f32 %v1014_v13, %v1010_v23  ;;  %v1020_v33 = vmul.f32 %v1018_v19, %v1007_v22 }
 0x3ba   : > { %v1148_v34 = vpop.permute.xlu0 %1147  ;;  %v1055_v35 = vpop.permute.xlu1 %1054  ;;  %v1049_v51 = vadd.f32 %v1045_v43, %v1019_v32  ;;  %v1050_v52 = vadd.f32 %v1046_v44, %v1020_v33 }
 0x3bb   : > { %v1065_v37 = vsel %vm1063_vm12, %v1062_v4, %v1055_v35  ;;  %v1071_v40 = vsel %vm1063_vm12, %v1055_v35, %v1062_v4 }
 0x3bc   : > { %v1082_v45 = vmul.f32 %v1075_v12, %v1071_v40  ;;  %v1083_v46 = vmul.f32 %v1079_v16, %v1065_v37 }
 0x3be   : > { %v1090_v53 = vrot.slane %v1082_v45, 6  ;;  %v1093_v54 = vrot.slane %v1083_v46, 6  ;;  %v1100_v56 = vpop.permute.xlu0 %1099  ;;  %v1150_v57 = vpop.permute.xlu1 %1149 }
 0x3bf   : > { %v1105_v61 = vsel %vm1104_vm15, %v1103_v21, %v1100_v56  ;;  %v1108_v62 = vsel %vm1104_vm15, %v1100_v56, %v1103_v21  ;;  %v1156_v0 = vsel %vm1155_vm0, %v1148_v34, %v1150_v57  ;;  %v1164_v1 = vsel %vm1155_vm0, %v1150_v57, %v1148_v34 }
 0x3c0   : > { %v1091_v3 = vsel %vm1088_vm14, %v1089_v47, %v1090_v53  ;;  %v1094_v4 = vsel %vm1088_vm14, %v1092_v48, %v1093_v54  ;;  %v1117_v7 = vmul.f32 %v1112_v31, %v1108_v62  ;;  %v1118_v9 = vmul.f32 %v1116_v36, %v1105_v61  ;;  %v2970_v61 = vld [vmem:[%s3910_s7 + $0x10] ss:$0 sm:$0xff]  ;;  %v2971_v62 = vld [vmem:[%s3910_s7 + $0x18] ss:$0 sm:$0xff] }
 0x3c1   : > { %v1097_v10 = vadd.f32 %v1091_v3, %v1049_v51  ;;  %v1098_v11 = vadd.f32 %v1094_v4, %v1050_v52  ;;  %v1174_v12 = vmul.f32 %v1169_v41, %v1156_v0  ;;  %v1175_v14 = vmul.f32 %v1173_v42, %v1164_v1 }
 0x3c2   : > { %v1121_v15 = vrot.slane %v1117_v7, 1  ;;  %v1122_v16 = vrot.slane %v1118_v9, 1  ;;  %v1152_v18 = vpop.permute.xlu0 %1151  ;;  %v1154_v5 = vpop.permute.xlu1 %1153  ;;  %v1210_v21 = vrot.slane %v3516_v60, %v3571_v49  ;;  %v1234_v31 = vrot.slane %v3511_v59, %v3574_v50 }
 0x3c3   : > { %v1157_v13 = vsel %vm1155_vm0, %v1152_v18, %v1154_v5  ;;  %v1165_v19 = vsel %vm1155_vm0, %v1154_v5, %v1152_v18  ;;  %v1183_v29 = vrot.slane %v1174_v12, 7  ;;  %v1186_v30 = vrot.slane %v1175_v14, 7 }
 0x3c4   : > { %v1125_v22 = vadd.f32 %v1121_v15, %v1097_v10  ;;  %v1126_v23 = vadd.f32 %v1122_v16, %v1098_v11  ;;  %v1176_v27 = vmul.f32 %v1169_v41, %v1157_v13  ;;  %v1177_v28 = vmul.f32 %v1173_v42, %v1165_v19 }
 0x3c5   : > { %v1238_v41 = vrot.slane %v3516_v60, %v3574_v50  ;;  %v3232_v54 = vmov 1966171168  }
 0x3c6   : > { %v1143_v32 = vadd.f32 %v1139_v25, %v1125_v22  ;;  %v1144_v33 = vadd.f32 %v1140_v26, %v1126_v23  ;;  %v1184_v34 = vrot.slane %v1176_v27, 7  ;;  %v1187_v35 = vrot.slane %v1177_v28, 7  ;;  %v1194_v36 = vpop.permute.xlu0 %1193  ;;  %v1196_v37 = vpop.permute.xlu1 %1195  ;;  %v1285_v27 = vld [vmem:[%s3909_s6] ss:$2 sm:$0x3] }
 0x3c7   : > { %v1198_v40 = vsel %vm1197_vm2, %v1194_v36, %v1196_v37  ;;  %v1202_v43 = vsel %vm1197_vm2, %v1196_v37, %v1194_v36  ;;  %v1292_v56 = vunpack.c.l.s4 %v3232_v54 }
 0x3c8   : > { %v1185_v42 = vsel %vm1182_vm1, %v1183_v29, %v1184_v34  ;;  %v1188_v44 = vsel %vm1182_vm1, %v1186_v30, %v1187_v35  ;;  %v1211_v45 = vmul.f32 %v1206_v20, %v1198_v40  ;;  %v1212_v46 = vmul.f32 %v1210_v21, %v1202_v43  ;;  %v2974_v30 = vld [vmem:[%s3909_s6 + $0x1] ss:$2 sm:$0x3] }
 0x3c9   : > { %v1191_v59 = vadd.f32 %v1185_v42, %v1143_v32  ;;  %v1192_v25 = vadd.f32 %v1188_v44, %v1144_v33  ;;  %v1293_v10 = vunpack.c.0.s8 %v1292_v56  ;;  %v1329_v43 = vadd.s32 8, %v3503_v55 }
 0x3ca   : > { %v1215_v26 = vrot.slane %v1211_v45, 2  ;;  %v1216_v47 = vrot.slane %v1212_v46, 2  ;;  %v1222_v48 = vpop.permute.xlu0 %1221  ;;  %v1224_v51 = vpop.permute.xlu1 %1223 }
 0x3cb   : > { %v1226_v52 = vsel %vm1225_vm3, %v1222_v48, %v1224_v51  ;;  %v1230_v53 = vsel %vm1225_vm3, %v1224_v51, %v1222_v48  ;;  %v1296_v19 = vsub.s32 %v1293_v10, %v3503_v55 }
 0x3cc   : > { %v1239_v57 = vmul.f32 %v1234_v31, %v1226_v52  ;;  %v1240_v60 = vmul.f32 %v1238_v41, %v1230_v53  ;;  %v1219_v0 = vadd.f32 %v1215_v26, %v1191_v59  ;;  %v1220_v1 = vadd.f32 %v1216_v47, %v1192_v25 }
 0x3ce   : > { %v1243_v3 = vrot.slane %v1239_v57, 5  ;;  %v1244_v4 = vrot.slane %v1240_v60, 5  ;;  %v1252_v7 = vpop.permute.xlu0 %1251  ;;  %v1254_v9 = vpop.permute.xlu1 %1253 }
 0x3cf   : > { %v1256_v11 = vsel %vm1255_vm4, %v1252_v7, %v1254_v9  ;;  %v1260_v12 = vsel %vm1255_vm4, %v1254_v9, %v1252_v7 }
 0x3d0   : > { %v1247_v14 = vadd.f32 %v1243_v3, %v1219_v0  ;;  %v1248_v15 = vadd.f32 %v1244_v4, %v1220_v1  ;;  %v1269_v16 = vmul.f32 %v2970_v61, %v1256_v11  ;;  %v1270_v18 = vmul.f32 %v2971_v62, %v1260_v12 }
 0x3d2   : > { %v3604_v5 = vadd.f32 %v1269_v16, %v1247_v14  ;;  %v3606_v13 = vadd.f32 %v1270_v18, %v1248_v15  ;;  %v3617_v33 = vpop.permute.xlu0 %1533 }
 0x3d4   : > { %v1286_v20 = vmul.f32 0.5, %v3604_v5  ;;  %v1287_v21 = vmul.f32 0.5, %v3606_v13 }
 0x3d6   : > { %v1290_v22 = vcombine.low %v1286_v20, %v1287_v21  ;;  %v3620_v46 = vpop.permute.xlu0 %1707 }
 0x3d8   : > { %v1297_v23 = vrot.slane %v1290_v22, %v1296_v19 }
 0x3da   : > { %v1304_v28 = vrot.slane %v1297_v23, %v1296_v19  ;;  %v1309_v29 = vcombine.high %v1297_v23, %v1297_v23  ;;  %v3644_v10 = vpop.permute.xlu0 %1881 }
 0x3dc   : > { %v1306_v31 = vadd.f32 %v1304_v28, %v1285_v27  ;;  %v1316_v32 = vrot.slane %v1309_v29, %v1296_v19 }
 0x3de   : > { %v1318_v34 = vadd.f32 %v2974_v30, %v1316_v32  ;;  %v1319_v35 = vfloor.f32 %v1306_v31  ;;  %v3660_v29 = vpop.permute.xlu0 %2055 }
 0x3e0   : > { %v1320_v36 = vfloor.f32 %v1318_v34  ;;  %v3084_v37 = vtrunc.f32 %v1319_v35  ;;  %v1323_v40 = vsub.f32 %v1306_v31, %v1319_v35 }
 0x3e2   : > { %v3085_v41 = vcvt.f32.s32 %v3084_v37  ;;  %v3086_v42 = vtrunc.f32 %v1320_v36  ;;  %v1324_v44 = vsub.f32 1.0, %v1323_v40  ;;  %v1325_v45 = vsub.f32 %v1318_v34, %v1320_v36 }
 0x3e3   : > { %v1374_v47 = vrot.slane %v1323_v40, %v3529_v6  ;;  %v1378_v60 = vrot.slane %v1323_v40, %v3519_v63  ;;  %v2315_v40 = vpop.permute.xlu0 %2314 }
 0x3e4   : > { %v3087_v59 = vcvt.f32.s32 %v3086_v42  ;;  %v1333_v25 = vrot.slane %v3085_v41, %v3529_v6  ;;  %v1337_v26 = vrot.slane %v3085_v41, %v3519_v63  ;;  %v1326_v48 = vsub.f32 1.0, %v1325_v45 }
 0x3e5   : > { %v1346_v51 = vrot.slane %v1324_v44, %v3529_v6  ;;  %v1350_v52 = vrot.slane %v1324_v44, %v3519_v63  ;;  %v1357_v53 = vadd.s32 1, %v3085_v41  ;;  %v3663_v30 = vrot.slane %v1325_v45, %v3529_v6  ;;  %v1621_v41 = vpop.permute.xlu1 %1620 }
 0x3e6   : > { %vm1338_vm5 = vcmp.eq.s32.totalorder %v3503_v55, %v1333_v25  ;;  %vm1339_vm6 = vcmp.eq.s32.totalorder %v3503_v55, %v1337_v26  ;;  %vm1340_vm7 = vcmp.eq.s32.totalorder %v1329_v43, %v1333_v25  ;;  %vm1341_vm8 = vcmp.eq.s32.totalorder %v1329_v43, %v1337_v26 }
 0x3e7   : > { %v1353_v54 = vsel %vm1338_vm5, %v1346_v51, 0.0  ;;  %v1354_v56 = vsel %vm1339_vm6, %v1350_v52, 0.0  ;;  %v1355_v57 = vsel %vm1340_vm7, %v1346_v51, 0.0  ;;  %v1356_v61 = vsel %vm1341_vm8, %v1350_v52, 0.0 }
 0x3e8   : > { %v1361_v62 = vrot.slane %v1357_v53, %v3529_v6  ;;  %v1365_v0 = vrot.slane %v1357_v53, %v3519_v63  ;;  %v3633_v1 = vrot.slane %v3087_v59, %v3529_v6  ;;  %v3636_v3 = vrot.slane %v3087_v59, %v3519_v63 }
 0x3e9   : > { %v3639_v4 = vrot.slane %v1326_v48, %v3529_v6  ;;  %v3642_v7 = vrot.slane %v1326_v48, %v3519_v63  ;;  %v1416_v9 = vadd.s32 1, %v3087_v59  ;;  %v3666_v31 = vrot.slane %v1325_v45, %v3519_v63  ;;  %v1795_v42 = vpop.permute.xlu1 %1794 }
 0x3ea   : > { %vm1366_vm9 = vcmp.eq.s32.totalorder %v3503_v55, %v1361_v62  ;;  %vm1367_vm10 = vcmp.eq.s32.totalorder %v3503_v55, %v1365_v0  ;;  %vm1368_vm12 = vcmp.eq.s32.totalorder %v1329_v43, %v1361_v62  ;;  %vm1369_vm13 = vcmp.eq.s32.totalorder %v1329_v43, %v1365_v0 }
 0x3eb   : > { %v1381_v11 = vsel %vm1366_vm9, %v1374_v47, 0.0  ;;  %v1382_v12 = vsel %vm1367_vm10, %v1378_v60, 0.0  ;;  %v1383_v14 = vsel %vm1368_vm12, %v1374_v47, 0.0  ;;  %v1384_v15 = vsel %vm1369_vm13, %v1378_v60, 0.0 }
 0x3ec   : > { %v1385_v16 = vadd.f32 %v1381_v11, %v1353_v54  ;;  %v1386_v18 = vadd.f32 %v1382_v12, %v1354_v56  ;;  %v1387_v19 = vadd.f32 %v1383_v14, %v1355_v57  ;;  %v1388_v20 = vadd.f32 %v1384_v15, %v1356_v61 }
 0x3ed   : > { %vm1399_vm14 = vcmp.eq.s32.totalorder %v1329_v43, %v3633_v1  ;;  %vm1400_vm15 = vcmp.eq.s32.totalorder %v1329_v43, %v3636_v3  ;;  %v3653_v23 = vrot.slane %v1416_v9, %v3529_v6  ;;  %v3656_v27 = vrot.slane %v1416_v9, %v3519_v63  ;;  %v1969_v44 = vpop.permute.xlu1 %1968 }
 0x3ee   : > { %v1414_v21 = vsel %vm1399_vm14, %v3639_v4, 0.0  ;;  %v1415_v22 = vsel %vm1400_vm15, %v3642_v7, 0.0  ;;  %v3658_v28 = vpack.c.bf16 %v1388_v20, %v1386_v18  ;;  %v3668_v32 = vpack.c.bf16 %v1387_v19, %v1385_v16 }
 0x3ef   : > { %vm1427_vm0 = vcmp.eq.s32.totalorder %v1329_v43, %v3653_v23  ;;  %vm1428_vm1 = vcmp.eq.s32.totalorder %v1329_v43, %v3656_v27  ;;  %v2489_v43 = vpop.permute.xlu0 %2488  ;;  %vm1425_vm2 = vcmp.eq.s32.totalorder %v3503_v55, %v3653_v23  ;;  %vm1426_vm3 = vcmp.eq.s32.totalorder %v3503_v55, %v3656_v27 }
 0x3f0   : > { %3013 = vmatprep.subr.bf16.mxu1 %v3658_v28  ;;  %v1442_v34 = vsel %vm1427_vm0, %v3663_v30, 0.0  ;;  %v1443_v35 = vsel %vm1428_vm1, %v3666_v31, 0.0  ;;  %3045 = vmatprep.subr.bf16.mxu0 %v3658_v28  ;;  %vm1397_vm4 = vcmp.eq.s32.totalorder %v3503_v55, %v3633_v1  ;;  %vm1398_vm5 = vcmp.eq.s32.totalorder %v3503_v55, %v3636_v3 }
 0x3f1   : > { %3015 = vmatpush1.bf16.msra.mxu1 %v3668_v32  ;;  %v3677_v36 = vadd.f32 %v1442_v34, %v1414_v21  ;;  %v3679_v37 = vadd.f32 %v1443_v35, %v1415_v22  ;;  %3047 = vmatpush1.bf16.msra.mxu0 %v3668_v32  ;;  %v2228_v45 = vpop.permute.xlu1 %2227  ;;  %v1440_v26 = vsel %vm1425_vm2, %v3663_v30, 0.0  ;;  %v1441_v47 = vsel %vm1426_vm3, %v3666_v31, 0.0 }
 0x3f2   : > { %3017 = vmatprep.subr.bf16.mxu1 %v3658_v28  ;;  %3053 = vmatprep.subr.bf16.mxu0 %v3658_v28  ;;  %v1413_v48 = vsel %vm1398_vm5, %v3642_v7, 0.0 }
 0x3f3   : > { %v3760_v52 = vadd.f32 %v1441_v47, %v1413_v48  ;;  %v2218_v56 = vrot.slane %v3677_v36, %v3529_v6  ;;  %v2222_v62 = vrot.slane %v3679_v37, %v3529_v6  ;;  %v2570_v34 = vrot.slane %v3679_v37, %v3506_v58 }
 0x3f4   : > { %2975 = vmatmul.mubr.msk.f32.vlgmr.msra.gmra.mrb[4].mxu1 %vm1028_vm11, %v3436_v38  ;;  %2983 = vmatmul.mubr.msk.f32.vlgmr.msra.gmra.mrb[12].mxu0 %vm1028_vm11, %v3438_v39  ;;  %v2744_v48 = vrot.slane %v3679_v37, %v3571_v49 }
 0x3f5   : > { %3019 = vmatpush1.bf16.msra.mxu1 %v3668_v32  ;;  %3055 = vmatpush1.bf16.msra.mxu0 %v3668_v32  ;;  %v1528_v55 = vrot.slane %v3760_v52, %v3529_v6  ;;  %v1615_v11 = vrot.slane %v3760_v52, %v3519_v63 }
 0x3f6   : > { %3021 = vmatprep.subr.bf16.mxu1 %v3658_v28  ;;  %3061 = vmatprep.subr.bf16.mxu0 %v3658_v28 }
 0x3f7   : > { %1601 = vmatprep.mubr.f32.mxu1 %v3223_v8  ;;  %2382 = vmatprep.mubr.f32.mxu0 %v3223_v8 }
 0x3f8   : > { %2976 = vmatmul.mubr.msk.f32.vlgmr.msra.gmra.mrb[6].mxu1 %vm1028_vm11, %v3617_v33  ;;  %2985 = vmatmul.mubr.msk.f32.vlgmr.msra.gmra.mrb[14].mxu0 %vm1028_vm11, %v2315_v40  ;;  %v2663_v33 = vpop.permute.xlu0 %2662 }
 0x3f9   : > { %3023 = vmatpush1.bf16.msra.mxu1 %v3668_v32  ;;  %3063 = vmatpush1.bf16.msra.mxu0 %v3668_v32 }
 0x3fa   : > { %3025 = vmatprep.subr.bf16.mxu1 %v3658_v28  ;;  %3069 = vmatprep.subr.bf16.mxu0 %v3658_v28 }
 0x3fb   : > { %1688 = vmatprep.mubr.f32.mxu1 %v3223_v8  ;;  %2556 = vmatprep.mubr.f32.mxu0 %v3223_v8 }
 0x3fc   : > { %2977 = vmatmul.mubr.msk.f32.vlgmr.msra.gmra.mrb[8].mxu1 %vm1028_vm11, %v1621_v41  ;;  %2987 = vmatmul.mubr.msk.f32.vlgmr.msra.gmra.mrb[16].mxu0 %vm1028_vm11, %v2489_v43 }
 0x3fd   : > { %3027 = vmatpush1.bf16.msra.mxu1 %v3668_v32  ;;  %3071 = vmatpush1.bf16.msra.mxu0 %v3668_v32 }
 0x3fe   : > { %3029 = vmatprep.subr.bf16.mxu1 %v3658_v28  ;;  %1775 = vmatprep.mubr.f32.mxu1 %v3223_v8 }
 0x3ff   : > { %2730 = vmatprep.mubr.f32.mxu0 %v3223_v8 }
 0x400   : > { %2978 = vmatmul.mubr.msk.f32.vlgmr.msra.gmra.mrb[10].mxu1 %vm1028_vm11, %v3620_v46  ;;  %2989 = vmatmul.mubr.msk.f32.vlgmr.msra.gmra.mrb[18].mxu0 %vm1028_vm11, %v2663_v33  ;;  %v2402_v46 = vpop.permute.xlu1 %2401 }
 0x401   : > { %3031 = vmatpush1.bf16.msra.mxu1 %v3668_v32  ;;  %1862 = vmatprep.mubr.f32.mxu1 %v3223_v8 }
 0x402   : > { %3033 = vmatprep.subr.bf16.mxu1 %v3658_v28 }
 0x404   : > { %2979 = vmatmul.mubr.msk.f32.vlgmr.msra.gmra.mrb[12].mxu1 %vm1028_vm11, %v1795_v42  ;;  %v2576_v59 = vpop.permute.xlu1 %2575 }
 0x405   : > { %3035 = vmatpush1.bf16.msra.mxu1 %v3668_v32  ;;  %1949 = vmatprep.mubr.f32.mxu1 %v3223_v8 }
 0x406   : > { %3037 = vmatprep.subr.bf16.mxu1 %v3658_v28 }
 0x408   : > { %2980 = vmatmul.mubr.msk.f32.vlgmr.msra.gmra.mrb[14].mxu1 %vm1028_vm11, %v3644_v10  ;;  %v2750_v25 = vpop.permute.xlu1 %2749  ;;  %v2392_v10 = vrot.slane %v3677_v36, %v3526_v2 }
 0x409   : > { %3039 = vmatpush1.bf16.msra.mxu1 %v3668_v32  ;;  %2036 = vmatprep.mubr.f32.mxu1 %v3223_v8 }
 0x40a   : > { %3041 = vmatprep.subr.bf16.mxu1 %v3658_v28 }
 0x40c   : > { %2981 = vmatmul.mubr.msk.f32.vlgmr.msra.gmra.mrb[16].mxu1 %vm1028_vm11, %v1969_v44 }
 0x40d   : > { %3043 = vmatpush1.bf16.msra.mxu1 %v3668_v32  ;;  %2123 = vmatprep.mubr.f32.mxu1 %v3223_v8 }
 0x40e   : > { %3049 = vmatprep.subr.bf16.mxu1 %v3658_v28 }
 0x410   : > { %2982 = vmatmul.mubr.msk.f32.vlgmr.msra.gmra.mrb[18].mxu1 %vm1028_vm11, %v3660_v29  ;;  %v1702_v29 = vrot.slane %v3760_v52, %v3526_v2 }
 0x411   : > { %3051 = vmatpush1.bf16.msra.mxu1 %v3668_v32  ;;  %2295 = vmatprep.mubr.f32.mxu1 %v3223_v8 }
 0x412   : > { %3057 = vmatprep.subr.bf16.mxu1 %v3658_v28 }
 0x414   : > { %2984 = vmatmul.mubr.msk.f32.vlgmr.msra.gmra.mrb[20].mxu1 %vm1028_vm11, %v2228_v45 }
 0x415   : > { %3059 = vmatpush1.bf16.msra.mxu1 %v3668_v32  ;;  %2469 = vmatprep.mubr.f32.mxu1 %v3223_v8 }
 0x416   : > { %3065 = vmatprep.subr.bf16.mxu1 %v3658_v28 }
 0x418   : > { %2986 = vmatmul.mubr.msk.f32.vlgmr.msra.gmra.mrb[22].mxu1 %vm1028_vm11, %v2402_v46  ;;  %v2740_v46 = vrot.slane %v3677_v36, %v3571_v49 }
 0x419   : > { %3067 = vmatpush1.bf16.msra.mxu1 %v3668_v32  ;;  %2643 = vmatprep.mubr.f32.mxu1 %v3223_v8 }
 0x41a   : > { %3073 = vmatprep.subr.bf16.mxu1 %v3658_v28  ;;  %v2566_v28 = vrot.slane %v3677_v36, %v3506_v58 }
 0x41c   : > { %2988 = vmatmul.mubr.msk.f32.vlgmr.msra.gmra.mrb[24].mxu1 %vm1028_vm11, %v2576_v59  ;;  %v1789_v59 = vrot.slane %v3760_v52, %v3547_v17 }
 0x41d   : > { %3075 = vmatpush1.bf16.msra.mxu1 %v3668_v32  ;;  %2817 = vmatprep.mubr.f32.mxu1 %v3223_v8  ;;  %v1412_v8 = vsel %vm1397_vm4, %v3639_v4, 0.0 }
 0x41e   : > { %v3758_v51 = vadd.f32 %v1440_v26, %v1412_v8 }
 0x420   : > { %2990 = vmatmul.mubr.msk.f32.vlgmr.msra.gmra.mrb[26].mxu1 %vm1028_vm11, %v2750_v25  ;;  %v1524_v53 = vrot.slane %v3758_v51, %v3529_v6  ;;  %v1611_v7 = vrot.slane %v3758_v51, %v3519_v63  ;;  %v2396_v6 = vrot.slane %v3679_v37, %v3526_v2  ;;  %v1698_v22 = vrot.slane %v3758_v51, %v3526_v2 }
 0x421   : > { %v1785_v42 = vrot.slane %v3758_v51, %v3547_v17  ;;  %v2972_v25 = vmul.f32 -1.442695, %v3604_v5 }
 0x423   : > { %3145 = vpow2.f32 %v2972_v25  ;;  %v2305_v25 = vrot.slane %v3677_v36, %v3519_v63 }
 0x4c7   : > { %v1516_v54 = vpop.f32.mrb[4].mxu1  ;;  %v2210_v60 = vpop.f32.mrb[12].mxu0 }
 0x4c8   : > { %v1529_v57 = vmul.f32 %v1524_v53, %v1516_v54  ;;  %v1518_v61 = vpop.f32.mrb[5].mxu1  ;;  %v3770_v0 = vmul.f32 %v2218_v56, %v2210_v60  ;;  %v2212_v3 = vpop.f32.mrb[13].mxu0  ;;  %v2973_v53 = vmul.f32 -1.442695, %v3606_v13 }
 0x4c9   : > { %v1530_v1 = vmul.f32 %v1528_v55, %v1518_v61  ;;  %v3772_v4 = vmul.f32 %v2222_v62, %v2212_v3  ;;  %v1872_v61 = vrot.slane %v3758_v51, %v3506_v58 }
 0x4ca   : > { %3147 = vpow2.f32 %v2973_v53 }
 0x4cb   : > { %v1603_v9 = vpop.f32.mrb[6].mxu1  ;;  %v2384_v14 = vpop.f32.mrb[14].mxu0 }
 0x4cc   : > { %v1616_v12 = vmul.f32 %v1611_v7, %v1603_v9  ;;  %v1605_v15 = vpop.f32.mrb[7].mxu1  ;;  %v3782_v16 = vmul.f32 %v2392_v10, %v2384_v14  ;;  %v2386_v19 = vpop.f32.mrb[15].mxu0  ;;  %v1959_v10 = vrot.slane %v3758_v51, %v3556_v24  ;;  %v1963_v14 = vrot.slane %v3760_v52, %v3556_v24 }
 0x4cd   : > { %v1617_v18 = vmul.f32 %v1615_v11, %v1605_v15  ;;  %v3784_v21 = vmul.f32 %v2396_v6, %v2386_v19 }
 0x4ce   : > { %v1618_v20 = vadd.f32 %v1616_v12, %v1529_v57 }
 0x4cf   : > { %v1619_v23 = vadd.f32 %v1617_v18, %v1530_v1  ;;  %v1690_v27 = vpop.f32.mrb[8].mxu1  ;;  %v2558_v31 = vpop.f32.mrb[16].mxu0  ;;  %v1876_v1 = vrot.slane %v3760_v52, %v3506_v58  ;;  %v2046_v58 = vrot.slane %v3758_v51, %v3571_v49 }
 0x4d0   : > { %v1703_v30 = vmul.f32 %v1698_v22, %v1690_v27  ;;  %v1692_v32 = vpop.f32.mrb[9].mxu1  ;;  %v3794_v35 = vmul.f32 %v2566_v28, %v2558_v31  ;;  %v2560_v43 = vpop.f32.mrb[17].mxu0 }
 0x4d1   : > { %v1704_v40 = vmul.f32 %v1702_v29, %v1692_v32  ;;  %v3796_v33 = vmul.f32 %v2570_v34, %v2560_v43  ;;  %v2133_v32 = vrot.slane %v3758_v51, %v3574_v50  ;;  %v2309_v51 = vrot.slane %v3679_v37, %v3519_v63 }
 0x4d2   : > { %v1705_v41 = vadd.f32 %v1703_v30, %v1618_v20  ;;  %v3146_v30 = vpop.eup %3145 }
 0x4d3   : > { %v1706_v44 = vadd.f32 %v1704_v40, %v1619_v23  ;;  %v1777_v45 = vpop.f32.mrb[10].mxu1  ;;  %v2732_v47 = vpop.f32.mrb[18].mxu0  ;;  %v2050_v23 = vrot.slane %v3760_v52, %v3571_v49 }
 0x4d4   : > { %v1790_v26 = vmul.f32 %v1785_v42, %v1777_v45  ;;  %v1779_v8 = vpop.f32.mrb[11].mxu1  ;;  %v3808_v54 = vmul.f32 %v2740_v46, %v2732_v47  ;;  %v2734_v55 = vpop.f32.mrb[19].mxu0  ;;  %v1279_v45 = vadd.f32 1.0, %v3146_v30 }
 0x4d5   : > { %v1791_v56 = vmul.f32 %v1789_v59, %v1779_v8  ;;  %v3810_v60 = vmul.f32 %v2744_v48, %v2734_v55  ;;  %v3148_v34 = vpop.eup %3147 }
 0x4d6   : > { %v1792_v57 = vadd.f32 %v1790_v26, %v1705_v41  ;;  %v2137_v41 = vrot.slane %v3760_v52, %v3574_v50  ;;  %v1280_v59 = vadd.f32 1.0, %v3148_v34  ;;  %3149 = vrcp.f32 %v1279_v45 }
 0x4d7   : > { %v1793_v62 = vadd.f32 %v1791_v56, %v1706_v44  ;;  %v1864_v5 = vpop.f32.mrb[12].mxu1 }
 0x4d8   : > { %v1877_v3 = vmul.f32 %v1872_v61, %v1864_v5  ;;  %v1866_v7 = vpop.f32.mrb[13].mxu1  ;;  %3151 = vrcp.f32 %v1280_v59  ;;  %v2483_v5 = vrot.slane %v3679_v37, %v3547_v17 }
 0x4d9   : > { %v1878_v13 = vmul.f32 %v1876_v1, %v1866_v7 }
 0x4da   : > { %v1879_v9 = vadd.f32 %v1877_v3, %v1792_v57  ;;  %v2479_v57 = vrot.slane %v3677_v36, %v3547_v17 }
 0x4db   : > { %v1880_v11 = vadd.f32 %v1878_v13, %v1793_v62  ;;  %v1951_v12 = vpop.f32.mrb[14].mxu1  ;;  %v2653_v13 = vrot.slane %v3677_v36, %v3556_v24 }
 0x4dc   : > { %v1964_v15 = vmul.f32 %v1959_v10, %v1951_v12  ;;  %v1953_v6 = vpop.f32.mrb[15].mxu1 }
 0x4dd   : > { %v1965_v18 = vmul.f32 %v1963_v14, %v1953_v6 }
 0x4de   : > { %v1966_v19 = vadd.f32 %v1964_v15, %v1879_v9 }
 0x4df   : > { %v1967_v20 = vadd.f32 %v1965_v18, %v1880_v11  ;;  %v2038_v22 = vpop.f32.mrb[16].mxu1  ;;  %v2657_v11 = vrot.slane %v3679_v37, %v3556_v24 }
 0x4e0   : > { %v2051_v27 = vmul.f32 %v2046_v58, %v2038_v22  ;;  %v2040_v28 = vpop.f32.mrb[17].mxu1  ;;  %v3150_v18 = vpop.eup %3149 }
 0x4e1   : > { %v2052_v29 = vmul.f32 %v2050_v23, %v2040_v28 }
 0x4e2   : > { %v2053_v31 = vadd.f32 %v2051_v27, %v1966_v19  ;;  %v3152_v24 = vpop.eup %3151 }
 0x4e3   : > { %v2054_v40 = vadd.f32 %v2052_v29, %v1967_v20  ;;  %v2125_v43 = vpop.f32.mrb[18].mxu1  ;;  %v2831_v20 = vrot.slane %v3679_v37, %v3574_v50  ;;  %v2839_v29 = vrot.slane %v3150_v18, %v3526_v2  ;;  %v2843_v30 = vrot.slane %v3152_v24, %v3526_v2 }
 0x4e4   : > { %v2138_v42 = vmul.f32 %v2133_v32, %v2125_v43  ;;  %v2127_v44 = vpop.f32.mrb[19].mxu1 }
 0x4e5   : > { %v2139_v46 = vmul.f32 %v2137_v41, %v2127_v44 }
 0x4e6   : > { %v2140_v49 = vadd.f32 %v2138_v42, %v2053_v31 }
 0x4e7   : > { %v2141_v26 = vadd.f32 %v2139_v46, %v2054_v40  ;;  %v2297_v47 = vpop.f32.mrb[20].mxu1 }
 0x4e8   : > { %v2225_v8 = vadd.f32 %v3770_v0, %v2140_v49  ;;  %v2310_v48 = vmul.f32 %v2305_v25, %v2297_v47  ;;  %v2299_v53 = vpop.f32.mrb[21].mxu1 }
 0x4e9   : > { %v2226_v52 = vadd.f32 %v3772_v4, %v2141_v26  ;;  %v2311_v56 = vmul.f32 %v2309_v51, %v2299_v53 }
 0x4ea   : > { %v2312_v55 = vadd.f32 %v2310_v48, %v2225_v8 }
 0x4eb   : > { %v2313_v61 = vadd.f32 %v2311_v56, %v2226_v52  ;;  %v2471_v62 = vpop.f32.mrb[22].mxu1 }
 0x4ec   : > { %v2399_v63 = vadd.f32 %v3782_v16, %v2312_v55  ;;  %v2484_v0 = vmul.f32 %v2479_v57, %v2471_v62  ;;  %v2473_v1 = vpop.f32.mrb[23].mxu1 }
 0x4ed   : > { %v2400_v3 = vadd.f32 %v3784_v21, %v2313_v61  ;;  %v2485_v7 = vmul.f32 %v2483_v5, %v2473_v1  ;;  %v2827_v21 = vrot.slane %v3677_v36, %v3574_v50 }
 0x4ee   : > { %v2486_v4 = vadd.f32 %v2484_v0, %v2399_v63 }
 0x4ef   : > { %v2487_v9 = vadd.f32 %v2485_v7, %v2400_v3  ;;  %v2645_v10 = vpop.f32.mrb[24].mxu1 }
 0x4f0   : > { %v2573_v12 = vadd.f32 %v3794_v35, %v2486_v4  ;;  %v2658_v17 = vmul.f32 %v2653_v13, %v2645_v10  ;;  %v2647_v14 = vpop.f32.mrb[25].mxu1 }
 0x4f1   : > { %v2574_v16 = vadd.f32 %v3796_v33, %v2487_v9  ;;  %v2659_v15 = vmul.f32 %v2657_v11, %v2647_v14 }
 0x4f2   : > { %v2660_v6 = vadd.f32 %v2658_v17, %v2573_v12 }
 0x4f3   : > { %v2661_v19 = vadd.f32 %v2659_v15, %v2574_v16  ;;  %v2819_v58 = vpop.f32.mrb[26].mxu1 }
 0x4f4   : > { %v2747_v35 = vadd.f32 %v3808_v54, %v2660_v6  ;;  %v2832_v22 = vmul.f32 %v2827_v21, %v2819_v58  ;;  %v2821_v23 = vpop.f32.mrb[27].mxu1 }
 0x4f5   : > { %v2748_v33 = vadd.f32 %v3810_v60, %v2661_v19  ;;  %v2833_v27 = vmul.f32 %v2831_v20, %v2821_v23 }
 0x4f6   : > { %v2834_v28 = vadd.f32 %v2832_v22, %v2747_v35 }
 0x4f7   : > { %v2835_v36 = vadd.f32 %v2833_v27, %v2748_v33 }
 0x4f8   : > { %v2844_v31 = vmul.f32 %v2839_v29, %v2834_v28 }
 0x4f9   : > { %v2845_v32 = vmul.f32 %v2843_v30, %v2835_v36 }
 0x4fa   : > { %v2846_v50 = vadd.f32 %v2844_v31, %v3436_v38 }
 0x4fb   : > { %v2847_v37 = vadd.f32 %v2845_v32, %v3438_v39 }
 0x4fd   : > { %v2850_v54 = vcombine.low %v2846_v50, %v2847_v37 }
 0x4ff   : > { %2852 = vst [vmem:[%s313_s23] sm:$0xff] %v2850_v54 }
 0x500   : > { %3166 = shalt.err (!%p3163_p3)
}
 0x501   : > { %s3167_s25 = scalar_lea.hbm %s3861_s13, 128  ;;  %s3171_s20 = scalar_lea.hbm %s3911_s8, 256 }
 0x502   : > { %p3168_p4 = scmp.ne.s32.totalorder %s3861_s13, %s3167_s25  ;;  %p3172_p9 = scmp.lt.u32.totalorder %s3861_s13, %s3911_s8 }
 0x503   : > { %p3173_p10 = scmp.lt.u32.totalorder %s3171_s20, %s3167_s25  ;;  %p3175_p12 = scmp.lt.u32.totalorder %s3167_s25, %s3861_s13 }
 0x504   : > { %p3169_p7 = pnand %p3168_p4, %p3317_p5 }
 0x505   : > { %p3174_p11 = por %p3173_p10, %p3172_p9 }
 0x506   : > { %p3170_p8 = pneg %p3169_p7 }
 0x507   : > { %p3176_p13 = por %p3175_p12, %p3174_p11 }
 0x509   : > { %p3177_p0 = pnand %p3176_p13, %p3170_p8 }
 0x50b   : > { %3180 = shalt.err (!%p3177_p0)
}
 0x50c   : > { %3088 = dma.vmem_to_hbm [thread:$0]  (%p3317_p5), %s3863_s19, 128, %s3861_s13, %s2854_s17  }
 0x50d PF: > { %p3094_p1 = scmp.ge.s32.totalorder %s3215_s30, 2  ;;  %s2880_s10 = sand.u32 1, %s3203_s27  }
 0x50e   : > { %s2881_s18 = scalar_lea.sflag [#allocation4], %s2880_s10 }
 0x50f   : > { %p3091_p2 = pnand %p3094_p1, %p3321_p6 }
 0x511   : > { %3198 = dma.done.wait (!%p3091_p2), %s2881_s18, 128  }
 0x512   : > { %3200 = vsyncadd (!%p3091_p2), %s2881_s18, 4294967168  ;;  %p18_p3 = scmp.ge.s32.totalorder %s3304_s11, 4   ;;  %s3923_s27 = smov %s3207_s28 }
 0x513   : > { %s3924_s28 = smov %s3211_s29  ;;  %s3925_s29 = smov %s3315_s14 }
 0x514   : > { %s3926_s30 = smov %s3304_s11  ;;  %20 = sbr.rel (!%p18_p3) target bundleno = 3 (0x3), region = 91 }
 0x51b   :  { %2886 = vsyncpa [#allocation4], 1 }
 0x51c   :  { %2888 = vsyncpa [#allocation4 + $0x1], 1 }

</bundles_post_ra>
